<compile_context>
chip_gen: v7x
topology: tpu7x:2x2x1
jax: 0.10.0
libtpu: 0.0.40
codegen_flags: <defaults>
</compile_context>

<pallas_src>
import math

import jax
import jax.numpy as jnp
from jax.experimental import pallas as pl
from jax.experimental.pallas import tpu as pltpu

_VMEM_LIMIT = 32 * 1024 * 1024


def _cp(dims):
    return pltpu.CompilerParams(dimension_semantics=dims,
                                vmem_limit_bytes=_VMEM_LIMIT)


def _full_spec(shape):
    ndim = len(shape)
    return pl.BlockSpec(shape, lambda i, _n=ndim: (0,) * _n)


def _pick_tile(d, cap, align):
    """Largest tile <= cap that divides d and is a multiple of `align`
    (or the full dim when d <= cap / no aligned divisor exists)."""
    if d <= cap:
        return d
    t = (cap // align) * align
    while t >= align:
        if d % t == 0:
            return t
        t -= align
    return d


# ----------------------------------------------------------------------------
# Generic tiled matmul (bf16 MXU inputs, f32 accumulate)
# ----------------------------------------------------------------------------
def pallas_matmul(a, b):
    M, K = a.shape
    K2, N = b.shape
    assert K == K2
    a = a.astype(jnp.bfloat16)
    b = b.astype(jnp.bfloat16)
    tm = _pick_tile(M, 512, 8)
    tn = _pick_tile(N, 512, 128)
    tk = _pick_tile(K, 1024, 128)

    def kernel(a_ref, b_ref, o_ref, acc_ref):
        @pl.when(pl.program_id(2) == 0)
        def _():
            acc_ref[...] = jnp.zeros_like(acc_ref)

        acc_ref[...] += jnp.dot(a_ref[...], b_ref[...],
                                preferred_element_type=jnp.float32)

        @pl.when(pl.program_id(2) == pl.num_programs(2) - 1)
        def _():
            o_ref[...] = acc_ref[...]

    return pl.pallas_call(
        kernel,
        out_shape=jax.ShapeDtypeStruct((M, N), jnp.float32),
        grid=(M // tm, N // tn, K // tk),
        in_specs=[pl.BlockSpec((tm, tk), lambda i, j, k: (i, k)),
                  pl.BlockSpec((tk, tn), lambda i, j, k: (k, j))],
        out_specs=pl.BlockSpec((tm, tn), lambda i, j, k: (i, j)),
        scratch_shapes=[pltpu.VMEM((tm, tn), jnp.float32)],
        compiler_params=_cp(("parallel", "parallel", "arbitrary")),
    )(a, b)


# ----------------------------------------------------------------------------
# Stride-1 3x3 conv: shift-accumulate kernel on the padded flat activation
# (no im2col patch matrix in HBM; the activation is read exactly once).
# The flattened input is padded by P = Wp+1 extra zero rows on both ends so
# every tap's shifted read stays in bounds and the output is stored as one
# full (Mp, tn) block.
# ----------------------------------------------------------------------------
def pallas_conv3x3_s1(x2, w_taps, Wp, P, Mp):
    Mx, Cin = x2.shape                     # Mx = Mp + 2*P
    Cout = w_taps.shape[-1]
    tn = Cout if Cout <= 256 else 256

    def kernel(x_ref, w_ref, o_ref):
        acc = jnp.zeros((Mp, tn), jnp.float32)
        for kh in range(3):
            for kw in range(3):
                off = (kh - 1) * Wp + (kw - 1)
                t = kh * 3 + kw
                acc = acc + jnp.dot(x_ref[P + off:P + off + Mp, :], w_ref[t],
                                    preferred_element_type=jnp.float32)
        o_ref[...] = acc

    return pl.pallas_call(
        kernel,
        out_shape=jax.ShapeDtypeStruct((Mp, Cout), jnp.float32),
        grid=(Cout // tn,),
        in_specs=[pl.BlockSpec((Mx, Cin), lambda j: (0, 0)),
                  pl.BlockSpec((9, Cin, tn), lambda j: (0, 0, j))],
        out_specs=pl.BlockSpec((Mp, tn), lambda j: (0, j)),
        compiler_params=_cp(("parallel",)),
    )(x2, w_taps)


def conv3x3_s1(x_nhwc, w_taps):
    N, H, W, Cin = x_nhwc.shape
    Cout = w_taps.shape[-1]
    Hp, Wp = H + 2, W + 2
    Mp = N * Hp * Wp
    P = ((Wp + 1 + 7) // 8) * 8            # max tap shift, rounded to sublanes
    xp = jnp.pad(x_nhwc, ((0, 0), (1, 1), (1, 1), (0, 0)))
    x2 = xp.reshape(Mp, Cin).astype(jnp.bfloat16)
    x2 = jnp.pad(x2, ((P, P), (0, 0)))
    out = pallas_conv3x3_s1(x2, w_taps, Wp, P, Mp)
    return out.reshape(N, Hp, Wp, Cout)[:, 1:1 + H, 1:1 + W, :]


# ----------------------------------------------------------------------------
# Small strided convs: im2col (tiny here) + tiled matmul
# ----------------------------------------------------------------------------
def conv_im2col(x_nhwc, w_flat, KH, KW, stride, pad):
    N, H, W, Cin = x_nhwc.shape
    Cout = w_flat.shape[-1]
    Ho = (H + 2 * pad - KH) // stride + 1
    Wo = (W + 2 * pad - KW) // stride + 1
    xp = jnp.pad(x_nhwc, ((0, 0), (pad, pad), (pad, pad), (0, 0)))
    views = []
    for kh in range(KH):
        for kw in range(KW):
            views.append(xp[:, kh:kh + stride * (Ho - 1) + 1:stride,
                             kw:kw + stride * (Wo - 1) + 1:stride, :])
    a = jnp.stack(views, axis=3).reshape(N * Ho * Wo, KH * KW * Cin)
    out = pallas_matmul(a.astype(jnp.bfloat16), w_flat)
    return out.reshape(N, Ho, Wo, Cout)


def conv1x1_strided(x_nhwc, w_cc, stride):
    a = x_nhwc[:, ::stride, ::stride, :]
    N, Ho, Wo, Cin = a.shape
    out = pallas_matmul(a.reshape(N * Ho * Wo, Cin).astype(jnp.bfloat16), w_cc)
    return out.reshape(N, Ho, Wo, -1)


# ----------------------------------------------------------------------------
# BatchNorm (training-mode, biased variance): two-pass tiled pipeline
# ----------------------------------------------------------------------------
def pallas_bn_stats(x2, gamma, beta, eps=1e-5):
    M, C = x2.shape
    tm = _pick_tile(M, 1024, 8)
    g2 = gamma.reshape(1, C).astype(jnp.float32)
    b2 = beta.reshape(1, C).astype(jnp.float32)

    def kernel(x_ref, g_ref, b_ref, scale_ref, shift_ref, s_ref, ss_ref):
        @pl.when(pl.program_id(0) == 0)
        def _():
            s_ref[...] = jnp.zeros_like(s_ref)
            ss_ref[...] = jnp.zeros_like(ss_ref)

        x = x_ref[...]
        s_ref[...] += jnp.sum(x, axis=0, keepdims=True)
        ss_ref[...] += jnp.sum(x * x, axis=0, keepdims=True)

        @pl.when(pl.program_id(0) == pl.num_programs(0) - 1)
        def _():
            mean = s_ref[...] * (1.0 / M)
            var = jnp.maximum(ss_ref[...] * (1.0 / M) - mean * mean, 0.0)
            scale = g_ref[...] * jax.lax.rsqrt(var + eps)
            scale_ref[...] = scale
            shift_ref[...] = b_ref[...] - mean * scale

    return pl.pallas_call(
        kernel,
        out_shape=(jax.ShapeDtypeStruct((1, C), jnp.float32),
                   jax.ShapeDtypeStruct((1, C), jnp.float32)),
        grid=(M // tm,),
        in_specs=[pl.BlockSpec((tm, C), lambda i: (i, 0)),
                  pl.BlockSpec((1, C), lambda i: (0, 0)),
                  pl.BlockSpec((1, C), lambda i: (0, 0))],
        out_specs=(pl.BlockSpec((1, C), lambda i: (0, 0)),
                   pl.BlockSpec((1, C), lambda i: (0, 0))),
        scratch_shapes=[pltpu.VMEM((1, C), jnp.float32),
                        pltpu.VMEM((1, C), jnp.float32)],
        compiler_params=_cp(("arbitrary",)),
    )(x2, g2, b2)


def pallas_bn_apply(x2, scale, shift, relu):
    M, C = x2.shape
    tm = _pick_tile(M, 1024, 8)

    def kernel(x_ref, sc_ref, sh_ref, o_ref):
        y = x_ref[...] * sc_ref[...] + sh_ref[...]
        if relu:
            y = jnp.maximum(y, 0.0)
        o_ref[...] = y

    return pl.pallas_call(
        kernel,
        out_shape=jax.ShapeDtypeStruct((M, C), jnp.float32),
        grid=(M // tm,),
        in_specs=[pl.BlockSpec((tm, C), lambda i: (i, 0)),
                  pl.BlockSpec((1, C), lambda i: (0, 0)),
                  pl.BlockSpec((1, C), lambda i: (0, 0))],
        out_specs=pl.BlockSpec((tm, C), lambda i: (i, 0)),
        compiler_params=_cp(("parallel",)),
    )(x2, scale, shift)


def batchnorm_relu(x_nhwc, gamma, beta, relu):
    N, H, W, C = x_nhwc.shape
    x2 = x_nhwc.reshape(N * H * W, C)
    scale, shift = pallas_bn_stats(x2, gamma, beta)
    y = pallas_bn_apply(x2, scale, shift, relu)
    return y.reshape(N, H, W, C)


# ----------------------------------------------------------------------------
# Fused bn2 + SRM (style pooling/gating) + residual add + ReLU
# (global batch statistics -> whole-array single block; math kept in f32)
# ----------------------------------------------------------------------------
def pallas_bn_srm_add_relu(out_nhwc, id_nhwc, bn_g, bn_b, cfc, srm_g, srm_b,
                           eps=1e-5):
    N, H, W, C = out_nhwc.shape
    HW = H * W
    # TODO(synk): torch.var(unbiased) is NaN when HW == 1; we assume HW > 1.
    x3 = out_nhwc.reshape(N, HW, C)
    i3 = id_nhwc.reshape(N, HW, C)
    g3 = bn_g.reshape(1, 1, C).astype(jnp.float32)
    b3 = bn_b.reshape(1, 1, C).astype(jnp.float32)
    c0 = cfc[:, 0].reshape(1, C).astype(jnp.float32)
    c1 = cfc[:, 1].reshape(1, C).astype(jnp.float32)
    sg = srm_g.reshape(1, C).astype(jnp.float32)
    sb = srm_b.reshape(1, C).astype(jnp.float32)

    def kernel(x_ref, id_ref, g_ref, b_ref, c0_ref, c1_ref, sg_ref, sb_ref,
               o_ref):
        x = x_ref[...]                                          # (N, HW, C)
        # bn2: training-mode batch stats over (N, HW), biased variance.
        mean = jnp.mean(jnp.mean(x, axis=1, keepdims=True),
                        axis=0, keepdims=True)                  # (1,1,C)
        var = jnp.mean(jnp.mean((x - mean) ** 2, axis=1, keepdims=True),
                       axis=0, keepdims=True)
        y = (x - mean) * jax.lax.rsqrt(var + eps) * g_ref[...] + b_ref[...]
        # SRM style pooling: per-sample mean / unbiased std over HW.
        ch_mean = jnp.mean(y, axis=1)                           # (N, C)
        diff = y - ch_mean[:, None, :]
        var_u = jnp.sum(diff * diff, axis=1) / float(HW - 1)    # torch.var
        std = jnp.sqrt(var_u + 1e-5)
        z = ch_mean * c0_ref[...] + std * c1_ref[...]           # (N, C)
        # SRM BN over the batch dim of z + sigmoid gate (EUP path).
        bm = jnp.mean(z, axis=0, keepdims=True)
        bv = jnp.mean((z - bm) ** 2, axis=0, keepdims=True)
        z_hat = (z - bm) * jax.lax.rsqrt(bv + 1e-5) * sg_ref[...] + sb_ref[...]
        gate = jax.nn.sigmoid(z_hat)
        # channel rescale + residual add + ReLU
        o_ref[...] = jnp.maximum(y * gate[:, None, :] + id_ref[...], 0.0)

    out = pl.pallas_call(
        kernel,
        out_shape=jax.ShapeDtypeStruct((N, HW, C), jnp.float32),
        grid=(1,),
        in_specs=[_full_spec((N, HW, C)), _full_spec((N, HW, C)),
                  _full_spec((1, 1, C)), _full_spec((1, 1, C)),
                  _full_spec((1, C)), _full_spec((1, C)),
                  _full_spec((1, C)), _full_spec((1, C))],
        out_specs=_full_spec((N, HW, C)),
        compiler_params=_cp(("arbitrary",)),
    )(x3, i3, g3, b3, c0, c1, sg, sb)
    return out.reshape(N, H, W, C)


# ----------------------------------------------------------------------------
# MaxPool2d(3, stride=2, padding=1) via 4 parity planes + in-kernel 9-way max
# ----------------------------------------------------------------------------
def pallas_maxpool_3x3_s2(x_nhwc):
    N, H, W, C = x_nhwc.shape
    Ho = (H - 1) // 2 + 1
    Wo = (W - 1) // 2 + 1
    neg = jnp.finfo(jnp.float32).min
    xp = jnp.pad(x_nhwc, ((0, 0), (1, 2), (1, 2), (0, 0)), constant_values=neg)
    planes = [xp[:, a::2, b::2, :][:, :Ho + 1, :Wo + 1, :]
              for a in (0, 1) for b in (0, 1)]
    pshape = (N, Ho + 1, Wo + 1, C)

    def kernel(p00, p01, p10, p11, o_ref):
        prefs = ((p00, p01), (p10, p11))
        m = None
        for i in range(3):
            for j in range(3):
                v = prefs[i % 2][j % 2][:, i // 2:i // 2 + Ho,
                                        j // 2:j // 2 + Wo, :]
                m = v if m is None else jnp.maximum(m, v)
        o_ref[...] = m

    return pl.pallas_call(
        kernel,
        out_shape=jax.ShapeDtypeStruct((N, Ho, Wo, C), jnp.float32),
        grid=(1,),
        in_specs=[_full_spec(pshape)] * 4,
        out_specs=_full_spec((N, Ho, Wo, C)),
        compiler_params=_cp(("arbitrary",)),
    )(*planes)


# ----------------------------------------------------------------------------
# AdaptiveAvgPool2d((1,1)) + Linear, fused
# ----------------------------------------------------------------------------
def pallas_avgpool_fc(x_nhwc, fc_w, fc_b):
    N, H, W, C = x_nhwc.shape
    HW = H * W
    x3 = x_nhwc.reshape(N, HW, C)
    w = fc_w.astype(jnp.bfloat16)
    b = fc_b.reshape(1, -1).astype(jnp.float32)
    nc = w.shape[1]

    def kernel(x_ref, w_ref, b_ref, o_ref):
        pooled = jnp.mean(x_ref[...], axis=1)                  # (N, C) f32
        o_ref[...] = jnp.dot(pooled.astype(jnp.bfloat16), w_ref[...],
                             preferred_element_type=jnp.float32) + b_ref[...]

    return pl.pallas_call(
        kernel,
        out_shape=jax.ShapeDtypeStruct((N, nc), jnp.float32),
        grid=(1,),
        in_specs=[_full_spec((N, HW, C)), _full_spec((C, nc)),
                  _full_spec((1, nc))],
        out_specs=_full_spec((N, nc)),
        compiler_params=_cp(("arbitrary",)),
    )(x3, w, b)


# ----------------------------------------------------------------------------
# Model: BasicBlock-based ResNet with SRM layers
# ----------------------------------------------------------------------------
def basic_block_forward(x, p):
    identity = x
    if p["stride"] == 1:
        out = conv3x3_s1(x, p["w1_taps"])
    else:
        w1_flat = p["w1_taps"].reshape(-1, p["w1_taps"].shape[-1])
        out = conv_im2col(x, w1_flat, 3, 3, p["stride"], 1)
    out = batchnorm_relu(out, p["bn1_g"], p["bn1_b"], relu=True)
    out = conv3x3_s1(out, p["w2_taps"])
    if "ds_w" in p:
        identity = conv1x1_strided(x, p["ds_w"], p["stride"])
        identity = batchnorm_relu(identity, p["ds_bn_g"], p["ds_bn_b"],
                                  relu=False)
    return pallas_bn_srm_add_relu(out, identity, p["bn2_g"], p["bn2_b"],
                                  p["cfc"], p["srm_bn_g"], p["srm_bn_b"])


def resnet_forward(x_nchw, params):
    x = jnp.transpose(x_nchw, (0, 2, 3, 1)).astype(jnp.float32)  # NCHW -> NHWC
    x = conv_im2col(x, params["conv1_w"], 7, 7, 2, 3)
    x = batchnorm_relu(x, params["bn1_g"], params["bn1_b"], relu=True)
    x = pallas_maxpool_3x3_s2(x)
    for lname in ("layer1", "layer2", "layer3", "layer4"):
        for blk in params[lname]:
            x = basic_block_forward(x, blk)
    return pallas_avgpool_fc(x, params["fc_w"], params["fc_b"])


# ----------------------------------------------------------------------------
# Deterministic parameter construction (pre-laid-out bf16 conv weights)
# ----------------------------------------------------------------------------
def _kaiming_conv(key, cout, cin, kh, kw):
    fan_out = cout * kh * kw
    std = math.sqrt(2.0 / fan_out)
    return jax.random.normal(key, (cout, cin, kh, kw), jnp.float32) * std


def _to_taps(w_oihw):
    cout, cin, kh, kw = w_oihw.shape
    return jnp.transpose(w_oihw, (2, 3, 1, 0)).reshape(
        kh * kw, cin, cout).astype(jnp.bfloat16)


def _to_flat(w_oihw):
    cout, cin, kh, kw = w_oihw.shape
    return jnp.transpose(w_oihw, (2, 3, 1, 0)).reshape(
        kh * kw * cin, cout).astype(jnp.bfloat16)


def make_params(key, layers=(1, 1, 1, 1), num_classes=4):
    keys = iter(jax.random.split(key, 128))
    p = {}
    p["conv1_w"] = _to_flat(_kaiming_conv(next(keys), 64, 3, 7, 7))
    p["bn1_g"] = jnp.ones((64,), jnp.float32)
    p["bn1_b"] = jnp.zeros((64,), jnp.float32)
    inplanes = 64
    for li, (planes, n_blocks, stride) in enumerate(
            zip((64, 128, 256, 512), layers, (1, 2, 2, 2))):
        blocks = []
        for bi in range(n_blocks):
            s = stride if bi == 0 else 1
            blk = {"stride": s}
            blk["w1_taps"] = _to_taps(
                _kaiming_conv(next(keys), planes, inplanes, 3, 3))
            blk["bn1_g"] = jnp.ones((planes,), jnp.float32)
            blk["bn1_b"] = jnp.zeros((planes,), jnp.float32)
            blk["w2_taps"] = _to_taps(
                _kaiming_conv(next(keys), planes, planes, 3, 3))
            blk["bn2_g"] = jnp.ones((planes,), jnp.float32)
            blk["bn2_b"] = jnp.zeros((planes,), jnp.float32)
            # SRM cfc: the module fills it with 0; use small deterministic
            # random values so the gating path is actually exercised.
            blk["cfc"] = 0.1 * jax.random.normal(next(keys), (planes, 2),
                                                 jnp.float32)
            blk["srm_bn_g"] = jnp.ones((planes,), jnp.float32)
            blk["srm_bn_b"] = jnp.zeros((planes,), jnp.float32)
            if s != 1 or inplanes != planes:
                dw = _kaiming_conv(next(keys), planes, inplanes, 1, 1)
                blk["ds_w"] = dw.reshape(planes, inplanes).T.astype(
                    jnp.bfloat16)
                blk["ds_bn_g"] = jnp.ones((planes,), jnp.float32)
                blk["ds_bn_b"] = jnp.zeros((planes,), jnp.float32)
            inplanes = planes
            blocks.append(blk)
        p[f"layer{li + 1}"] = blocks
    p["fc_w"] = (jax.random.normal(next(keys), (512, num_classes), jnp.float32)
                 * (1.0 / math.sqrt(512.0))).astype(jnp.bfloat16)
    p["fc_b"] = jnp.zeros((num_classes,), jnp.float32)
    return p


if __name__ == "__main__":
    key = jax.random.PRNGKey(0)
    pkey, xkey = jax.random.split(key)
    # BasicBlock ResNet with one block per stage (class supports any layer cfg).
    params = make_params(pkey, layers=(1, 1, 1, 1), num_classes=4)
    # PyTorch NCHW input; 64x64 spatial keeps every SRM pooling window > 1 px.
    x = jax.random.normal(xkey, (2, 3, 64, 64), jnp.float32)
    out = resnet_forward(x, params)
    out = jax.block_until_ready(out)
    assert out.shape == (2, 4), out.shape
    assert bool(jnp.all(jnp.isfinite(out)))
    print("KERNEL_OK")
</pallas_src>

<mosaic_0001>
module attributes {stable_mosaic.version = 11 : i64} {
  func.func @kernel(%arg0: i32, %arg1: i32, %arg2: i32, %arg3: memref<512x147xbf16, #tpu.memory_space<vmem>>, %arg4: memref<147x64xbf16, #tpu.memory_space<vmem>>, %arg5: memref<512x64xf32, #tpu.memory_space<vmem>>, %arg6: memref<512x64xf32, #tpu.memory_space<vmem>>) attributes {dimension_semantics = [#tpu.dimension_semantics<parallel>, #tpu.dimension_semantics<parallel>, #tpu.dimension_semantics<arbitrary>], iteration_bounds = array<i64: 4, 1, 1>, scalar_prefetch = 0 : i64, scratch_operands = 1 : i64, tpu.core_type = #tpu.core_type<tc>, window_params = [{transform_indices = @transform_0, window_bounds = array<i64: 512, 147>}, {transform_indices = @transform_1, window_bounds = array<i64: 147, 64>}, {transform_indices = @transform_2, window_bounds = array<i64: 512, 64>}]} {
    %c0_i32 = arith.constant 0 : i32
    %0 = arith.cmpi eq, %arg2, %c0_i32 : i32
    %1 = arith.extui %0 : i1 to i32
    %c0_i32_0 = arith.constant 0 : i32
    %2 = arith.cmpi ne, %1, %c0_i32_0 : i32
    scf.if %2 {
      %cst_10 = arith.constant 0.000000e+00 : f32
      %12 = vector.broadcast %cst_10 : f32 to vector<512x64xf32>
      %c0_11 = arith.constant 0 : index
      %c0_12 = arith.constant 0 : index
      %13 = vector.load %arg6[%c0_11, %c0_12] : memref<512x64xf32, #tpu.memory_space<vmem>>, vector<512x64xf32>
      tpu.vector_store %arg6[%c0_11, %c0_12], %12 {strides = array<i32>} : memref<512x64xf32, #tpu.memory_space<vmem>>, vector<512x64xf32>,
    } else {
    }
    %c0 = arith.constant 0 : index
    %c0_1 = arith.constant 0 : index
    %3 = vector.load %arg6[%c0, %c0_1] : memref<512x64xf32, #tpu.memory_space<vmem>>, vector<512x64xf32>
    %c0_2 = arith.constant 0 : index
    %c0_3 = arith.constant 0 : index
    %4 = vector.load %arg3[%c0_2, %c0_3] : memref<512x147xbf16, #tpu.memory_space<vmem>>, vector<512x147xbf16>
    %c0_4 = arith.constant 0 : index
    %c0_5 = arith.constant 0 : index
    %5 = vector.load %arg4[%c0_4, %c0_5] : memref<147x64xbf16, #tpu.memory_space<vmem>>, vector<147x64xbf16>
    %cst = arith.constant dense<0.000000e+00> : vector<512x64xf32>
    %6 = tpu.matmul %4, %5, %cst {dimension_numbers = #tpu.dot_dimension_numbers<[1], [0], [0], [1], [0, 0, 1, 1], [], []>} : vector<512x147xbf16>, vector<147x64xbf16>, vector<512x64xf32> -> vector<512x64xf32>
    %7 = arith.addf %3, %6 : vector<512x64xf32>
    %c0_6 = arith.constant 0 : index
    %c0_7 = arith.constant 0 : index
    %8 = vector.load %arg6[%c0_6, %c0_7] : memref<512x64xf32, #tpu.memory_space<vmem>>, vector<512x64xf32>
    tpu.vector_store %arg6[%c0_6, %c0_7], %7 {strides = array<i32>} : memref<512x64xf32, #tpu.memory_space<vmem>>, vector<512x64xf32>,
    %c0_i32_8 = arith.constant 0 : i32
    %9 = arith.cmpi eq, %arg2, %c0_i32_8 : i32
    %10 = arith.extui %9 : i1 to i32
    %c0_i32_9 = arith.constant 0 : i32
    %11 = arith.cmpi ne, %10, %c0_i32_9 : i32
    scf.if %11 {
      %c0_10 = arith.constant 0 : index
      %c0_11 = arith.constant 0 : index
      %12 = vector.load %arg6[%c0_10, %c0_11] : memref<512x64xf32, #tpu.memory_space<vmem>>, vector<512x64xf32>
      %c0_12 = arith.constant 0 : index
      %c0_13 = arith.constant 0 : index
      %13 = vector.load %arg5[%c0_12, %c0_13] : memref<512x64xf32, #tpu.memory_space<vmem>>, vector<512x64xf32>
      tpu.vector_store %arg5[%c0_12, %c0_13], %12 {strides = array<i32>} : memref<512x64xf32, #tpu.memory_space<vmem>>, vector<512x64xf32>,
    } else {
    }
    return
  }
  func.func @transform_0(%arg0: i32, %arg1: i32, %arg2: i32) -> (i32, i32) {
    %c0_i32 = arith.constant 0 : i32
    return %arg0, %arg2 : i32, i32
  }
  func.func @transform_1(%arg0: i32, %arg1: i32, %arg2: i32) -> (i32, i32) {
    %c0_i32 = arith.constant 0 : i32
    return %arg2, %arg1 : i32, i32
  }
  func.func @transform_2(%arg0: i32, %arg1: i32, %arg2: i32) -> (i32, i32) {
    %c0_i32 = arith.constant 0 : i32
    return %arg0, %arg1 : i32, i32
  }
}

</mosaic_0001>

<bundles_post_ra>
// kernel: tpu_custom_call.1
= control target key start
LH: loop header
LB: loop body
LE: loop exit
PB: predicated region body
PF: predicated region fallthrough
CT: control target
= control target key end

     0   :  { %s1858_s9 = smov 0   ;;  %s1860_s10 = smov 0   ;;  %s2372_s0 = inlined_call_operand.vmem [shape: bf16[2048,147], index: 0, kind: input, shape index: {}]   ;;  %s2373_s1 = inlined_call_operand.vmem [shape: bf16[147,64], index: 1, kind: input, shape index: {}]   ;;  %s2374_s2 = inlined_call_operand.vmem [shape: f32[2048,64], index: 2, kind: output, shape index: {}]  }
   0x1   :  { %s1862_s11 = smov 0  }
   0x2 LB: > { %s31_s12 = sadd.s32 1, %s1834_s10  ;;  %p1548_p0 = scmp.ge.s32.totalorder %s1838_s11, 1  ;;  %s1838_s11 = sphi %s1862_s11, %s12_s11   ;;  %s1834_s10 = sphi %s1860_s10, %s2376_s10   ;;  %s1830_s9 = sphi %s1858_s9, %s2375_s9  }
   0x3   : > { %p33_p1 = scmp.ge.s32.totalorder %s31_s12, 4  ;;  %p158_p2 = scmp.lt.s32.totalorder %s1838_s11, 5 }
   0x5   : > { %s2378_s12 = smov (%p33_p1, %s31_s12), 0  ;;  %p159_p3 = pnand %p1548_p0, %p158_p2 }
   0x6   : > { %v1710_v0 = vld [vmem:[%s2373_s1] sm:$0xff] (!%p159_p3)   ;;  %v1840_v1 = vmov (!%p159_p3), 0   ;;  %v1711_v2 = vld [vmem:[%s2373_s1 + $0x8] sm:$0xff] (!%p159_p3)   ;;  %v1712_v3 = vld [vmem:[%s2373_s1 + $0x10] sm:$0xff] (!%p159_p3)   ;;  %s1549_s19 = sshll.u32 (!%p159_p3), %s1830_s9, 6  ;;  %vm788_vm0 = vcmask (!%p159_p3), 154624  }
   0x7   : > { %162 = sbr.rel (%p159_p3) target bundleno = 393 (0x189), region = 28  ;;  %892 = vmatprep.subr.bf16.mxu0 (!%p159_p3), %v1840_v1  ;;  %1663 = vmatprep.subr.bf16.mxu1 (!%p159_p3), %v1840_v1  ;;  %p198_p4 = scmp.lt.s32.totalorder (!%p159_p3), %s1549_s19, 255  ;;  %v1713_v4 = vld [vmem:[%s2373_s1 + $0x18] sm:$0xff] (!%p159_p3)   ;;  %v1714_v5 = vld [vmem:[%s2373_s1 + $0x20] sm:$0xff] (!%p159_p3)   ;;  %v1715_v8 = vld [vmem:[%s2373_s1 + $0x28] sm:$0xff] (!%p159_p3)   ;;  %vm885_vm1 = vcmask (!%p159_p3), 1040384  }
   0x8   : > { %893 = vmatpush1.bf16.msra.mxu0 (!%p159_p3), %v1710_v0  ;;  %1673 = vmatpush1.bf16.msra.mxu1 (!%p159_p3), %v1710_v0  ;;  %v1716_v9 = vld [vmem:[%s2373_s1 + $0x30] sm:$0xff] (!%p159_p3)   ;;  %v1717_v10 = vld [vmem:[%s2373_s1 + $0x38] sm:$0xff] (!%p159_p3)   ;;  %vm886_vm2 = vcmask (!%p159_p3), 1041408   ;;  %v1841_v11 = vmov (!%p159_p3), 65535   ;;  %v1718_v13 = vld [vmem:[%s2373_s1 + $0x40] sm:$0xff] (!%p159_p3)   ;;  %vm231_vm3 = vcmask (!%p159_p3), 523264  }
   0x9   : > { %894 = vmatprep.subr.bf16.mxu0 (!%p159_p3), %v1840_v1  ;;  %1664 = vmatprep.subr.bf16.mxu1 (!%p159_p3), %v1840_v1  ;;  %v887_v12 = vsel (!%p159_p3), %vm885_vm1, 4294967295, %v1841_v11  ;;  %v1719_v14 = vld [vmem:[%s2373_s1 + $0x48] ss:$0 sps:$4 sm:$0x33] (!%p159_p3)   ;;  %v1842_v17 = vmov (!%p159_p3), 0.0  }
   0xa   : > { %v888_v15 = vsel (!%p159_p3), %vm886_vm2, %v887_v12, 0  ;;  %232 = vst.msk [vmem:[#allocation2] sm:$0xff] (!%p159_p3), %vm231_vm3, %v1842_v17  ;;  %233 = vst.msk [vmem:[#allocation2 + $0x8] sm:$0xff] (!%p159_p3), %vm231_vm3, %v1842_v17 }
   0xb   : > { %v1938_v16 = vand.u32 (!%p159_p3), %v1719_v14, %v888_v15  ;;  %234 = vst.msk [vmem:[#allocation2 + $0x10] sm:$0xff] (!%p159_p3), %vm231_vm3, %v1842_v17  ;;  %235 = vst.msk [vmem:[#allocation2 + $0x18] sm:$0xff] (!%p159_p3), %vm231_vm3, %v1842_v17 }
   0xc   : > { %895 = vmatpush1.bf16.msra.mxu0 (!%p159_p3), %v1711_v2  ;;  %1674 = vmatpush1.bf16.msra.mxu1 (!%p159_p3), %v1711_v2  ;;  %236 = vst.msk [vmem:[#allocation2 + $0x20] sm:$0xff] (!%p159_p3), %vm231_vm3, %v1842_v17  ;;  %237 = vst.msk [vmem:[#allocation2 + $0x28] sm:$0xff] (!%p159_p3), %vm231_vm3, %v1842_v17 }
   0xd   : > { %896 = vmatprep.subr.bf16.mxu0 (!%p159_p3), %v1840_v1  ;;  %1665 = vmatprep.subr.bf16.mxu1 (!%p159_p3), %v1840_v1  ;;  %238 = vst.msk [vmem:[#allocation2 + $0x30] sm:$0xff] (!%p159_p3), %vm231_vm3, %v1842_v17  ;;  %239 = vst.msk [vmem:[#allocation2 + $0x38] sm:$0xff] (!%p159_p3), %vm231_vm3, %v1842_v17 }
   0xe   : > { %s2380_s19 = smov (!%p198_p4, %s1549_s19), 255  ;;  %240 = vst.msk [vmem:[#allocation2 + $0x40] sm:$0xff] %vm231_vm3, %v1842_v17  ;;  %241 = vst.msk [vmem:[#allocation2 + $0x48] sm:$0xff] %vm231_vm3, %v1842_v17 }
   0xf   : > { %s1662_s22 = sshll.u32 %s2380_s19, 3  ;;  %242 = vst.msk [vmem:[#allocation2 + $0x50] sm:$0xff] %vm231_vm3, %v1842_v17  ;;  %243 = vst.msk [vmem:[#allocation2 + $0x58] sm:$0xff] %vm231_vm3, %v1842_v17 }
  0x10   : > { %897 = vmatpush1.bf16.msra.mxu0 %v1712_v3  ;;  %1675 = vmatpush1.bf16.msra.mxu1 %v1712_v3  ;;  %s1904_s25 = scalar_lea.vmem %s2372_s0, %s1662_s22  ;;  %244 = vst.msk [vmem:[#allocation2 + $0x60] sm:$0xff] %vm231_vm3, %v1842_v17  ;;  %245 = vst.msk [vmem:[#allocation2 + $0x68] sm:$0xff] %vm231_vm3, %v1842_v17  ;;  %s2173_s15 = scalar_lea.vmem %s2374_s2, %s1662_s22 }
  0x11   : > { %898 = vmatprep.subr.bf16.mxu0 %v1840_v1  ;;  %1666 = vmatprep.subr.bf16.mxu1 %v1840_v1  ;;  %v1722_v6 = vld [vmem:[%s1904_s25 + $0x4] ss:$8 sps:$4 sm:$0xff]   ;;  %246 = vst.msk [vmem:[#allocation2 + $0x70] sm:$0xff] %vm231_vm3, %v1842_v17  ;;  %247 = vst.msk [vmem:[#allocation2 + $0x78] sm:$0xff] %vm231_vm3, %v1842_v17  ;;  %v1720_v18 = vld [vmem:[%s1904_s25] ss:$8 sps:$4 sm:$0xff]  }
  0x12   : > { %v1725_v7 = vld [vmem:[%s1904_s25 + $0x104] ss:$8 sps:$4 sm:$0xff]   ;;  %1628 = vmatprep.mubr.msk.bf16.mxu0 %vm788_vm0, %v1722_v6  ;;  %248 = vst.msk [vmem:[#allocation2 + $0x80] sm:$0xff] %vm231_vm3, %v1842_v17  ;;  %249 = vst.msk [vmem:[#allocation2 + $0x88] sm:$0xff] %vm231_vm3, %v1842_v17  ;;  %v1723_v19 = vld [vmem:[%s1904_s25 + $0x100] ss:$8 sps:$4 sm:$0xff]  }
  0x13   : > { %1644 = vmatprep.mubr.msk.bf16.mxu1 %vm788_vm0, %v1725_v7  ;;  %250 = vst.msk [vmem:[#allocation2 + $0x90] sm:$0xff] %vm231_vm3, %v1842_v17  ;;  %251 = vst.msk [vmem:[#allocation2 + $0x98] sm:$0xff] %vm231_vm3, %v1842_v17  ;;  %v1726_v20 = vld [vmem:[%s1904_s25 + $0x14] ss:$8 sps:$4 sm:$0xff]   ;;  %v1730_v22 = vld [vmem:[%s1904_s25 + $0x10] ss:$8 sps:$4 sm:$0xff]  }
  0x14   : > { %899 = vmatpush1.bf16.msra.mxu0 %v1713_v4  ;;  %1676 = vmatpush1.bf16.msra.mxu1 %v1713_v4  ;;  %252 = vst.msk [vmem:[#allocation2 + $0xa0] sm:$0xff] %vm231_vm3, %v1842_v17  ;;  %253 = vst.msk [vmem:[#allocation2 + $0xa8] sm:$0xff] %vm231_vm3, %v1842_v17  ;;  %v1728_v21 = vld [vmem:[%s1904_s25 + $0x114] ss:$8 sps:$4 sm:$0xff]   ;;  %v1731_v23 = vld [vmem:[%s1904_s25 + $0x110] ss:$8 sps:$4 sm:$0xff]  }
  0x15   : > { %900 = vmatprep.subr.bf16.mxu0 %v1840_v1  ;;  %1667 = vmatprep.subr.bf16.mxu1 %v1840_v1  ;;  %254 = vst.msk [vmem:[#allocation2 + $0xb0] sm:$0xff] %vm231_vm3, %v1842_v17  ;;  %255 = vst.msk [vmem:[#allocation2 + $0xb8] sm:$0xff] %vm231_vm3, %v1842_v17  ;;  %v1732_v24 = vld [vmem:[%s1904_s25 + $0x24] ss:$8 sps:$4 sm:$0xff]   ;;  %v1736_v26 = vld [vmem:[%s1904_s25 + $0x20] ss:$8 sps:$4 sm:$0xff]  }
  0x16   : > { %256 = vst.msk [vmem:[#allocation2 + $0xc0] sm:$0xff] %vm231_vm3, %v1842_v17  ;;  %257 = vst.msk [vmem:[#allocation2 + $0xc8] sm:$0xff] %vm231_vm3, %v1842_v17  ;;  %v1734_v25 = vld [vmem:[%s1904_s25 + $0x124] ss:$8 sps:$4 sm:$0xff]   ;;  %v1737_v27 = vld [vmem:[%s1904_s25 + $0x120] ss:$8 sps:$4 sm:$0xff]  }
  0x17   : > { %258 = vst.msk [vmem:[#allocation2 + $0xd0] sm:$0xff] %vm231_vm3, %v1842_v17  ;;  %259 = vst.msk [vmem:[#allocation2 + $0xd8] sm:$0xff] %vm231_vm3, %v1842_v17  ;;  %v1738_v28 = vld [vmem:[%s1904_s25 + $0x34] ss:$8 sps:$4 sm:$0xff]   ;;  %v1742_v30 = vld [vmem:[%s1904_s25 + $0x30] ss:$8 sps:$4 sm:$0xff]  }
  0x18   : > { %901 = vmatpush1.bf16.msra.mxu0 %v1714_v5  ;;  %1677 = vmatpush1.bf16.msra.mxu1 %v1714_v5  ;;  %260 = vst.msk [vmem:[#allocation2 + $0xe0] sm:$0xff] %vm231_vm3, %v1842_v17  ;;  %261 = vst.msk [vmem:[#allocation2 + $0xe8] sm:$0xff] %vm231_vm3, %v1842_v17  ;;  %v1740_v29 = vld [vmem:[%s1904_s25 + $0x134] ss:$8 sps:$4 sm:$0xff]   ;;  %v1743_v31 = vld [vmem:[%s1904_s25 + $0x130] ss:$8 sps:$4 sm:$0xff]  }
  0x19   : > { %902 = vmatprep.subr.bf16.mxu0 %v1840_v1  ;;  %1668 = vmatprep.subr.bf16.mxu1 %v1840_v1  ;;  %262 = vst.msk [vmem:[#allocation2 + $0xf0] sm:$0xff] %vm231_vm3, %v1842_v17  ;;  %263 = vst.msk [vmem:[#allocation2 + $0xf8] sm:$0xff] %vm231_vm3, %v1842_v17  ;;  %v1744_v32 = vld [vmem:[%s1904_s25 + $0x44] ss:$8 sps:$4 sm:$0xff]   ;;  %v1748_v34 = vld [vmem:[%s1904_s25 + $0x40] ss:$8 sps:$4 sm:$0xff]  }
  0x1a   : > { %264 = vst.msk [vmem:[#allocation2 + $0x100] sm:$0xff] %vm231_vm3, %v1842_v17  ;;  %265 = vst.msk [vmem:[#allocation2 + $0x108] sm:$0xff] %vm231_vm3, %v1842_v17  ;;  %v1746_v33 = vld [vmem:[%s1904_s25 + $0x144] ss:$8 sps:$4 sm:$0xff]   ;;  %v1749_v35 = vld [vmem:[%s1904_s25 + $0x140] ss:$8 sps:$4 sm:$0xff]  }
  0x1b   : > { %266 = vst.msk [vmem:[#allocation2 + $0x110] sm:$0xff] %vm231_vm3, %v1842_v17  ;;  %267 = vst.msk [vmem:[#allocation2 + $0x118] sm:$0xff] %vm231_vm3, %v1842_v17  ;;  %v1750_v36 = vld [vmem:[%s1904_s25 + $0x54] ss:$8 sps:$4 sm:$0xff]   ;;  %v1754_v38 = vld [vmem:[%s1904_s25 + $0x50] ss:$8 sps:$4 sm:$0xff]  }
  0x1c   : > { %903 = vmatpush1.bf16.msra.mxu0 %v1715_v8  ;;  %1678 = vmatpush1.bf16.msra.mxu1 %v1715_v8  ;;  %268 = vst.msk [vmem:[#allocation2 + $0x120] sm:$0xff] %vm231_vm3, %v1842_v17  ;;  %269 = vst.msk [vmem:[#allocation2 + $0x128] sm:$0xff] %vm231_vm3, %v1842_v17  ;;  %v1752_v37 = vld [vmem:[%s1904_s25 + $0x154] ss:$8 sps:$4 sm:$0xff]   ;;  %v1755_v39 = vld [vmem:[%s1904_s25 + $0x150] ss:$8 sps:$4 sm:$0xff]  }
  0x1d   : > { %904 = vmatprep.subr.bf16.mxu0 %v1840_v1  ;;  %1669 = vmatprep.subr.bf16.mxu1 %v1840_v1  ;;  %270 = vst.msk [vmem:[#allocation2 + $0x130] sm:$0xff] %vm231_vm3, %v1842_v17  ;;  %271 = vst.msk [vmem:[#allocation2 + $0x138] sm:$0xff] %vm231_vm3, %v1842_v17  ;;  %v1756_v40 = vld [vmem:[%s1904_s25 + $0x64] ss:$8 sps:$4 sm:$0xff]   ;;  %v1760_v42 = vld [vmem:[%s1904_s25 + $0x60] ss:$8 sps:$4 sm:$0xff]  }
  0x1e   : > { %272 = vst.msk [vmem:[#allocation2 + $0x140] sm:$0xff] %vm231_vm3, %v1842_v17  ;;  %273 = vst.msk [vmem:[#allocation2 + $0x148] sm:$0xff] %vm231_vm3, %v1842_v17  ;;  %v1758_v41 = vld [vmem:[%s1904_s25 + $0x164] ss:$8 sps:$4 sm:$0xff]   ;;  %v1761_v43 = vld [vmem:[%s1904_s25 + $0x160] ss:$8 sps:$4 sm:$0xff]  }
  0x1f   : > { %274 = vst.msk [vmem:[#allocation2 + $0x150] sm:$0xff] %vm231_vm3, %v1842_v17  ;;  %275 = vst.msk [vmem:[#allocation2 + $0x158] sm:$0xff] %vm231_vm3, %v1842_v17  ;;  %v1762_v44 = vld [vmem:[%s1904_s25 + $0x74] ss:$8 sps:$4 sm:$0xff]   ;;  %v1766_v46 = vld [vmem:[%s1904_s25 + $0x70] ss:$8 sps:$4 sm:$0xff]  }
  0x20   : > { %905 = vmatpush1.bf16.msra.mxu0 %v1716_v9  ;;  %1679 = vmatpush1.bf16.msra.mxu1 %v1716_v9  ;;  %276 = vst.msk [vmem:[#allocation2 + $0x160] sm:$0xff] %vm231_vm3, %v1842_v17  ;;  %277 = vst.msk [vmem:[#allocation2 + $0x168] sm:$0xff] %vm231_vm3, %v1842_v17  ;;  %v1764_v45 = vld [vmem:[%s1904_s25 + $0x174] ss:$8 sps:$4 sm:$0xff]   ;;  %v1767_v47 = vld [vmem:[%s1904_s25 + $0x170] ss:$8 sps:$4 sm:$0xff]  }
  0x21   : > { %906 = vmatprep.subr.bf16.mxu0 %v1840_v1  ;;  %1670 = vmatprep.subr.bf16.mxu1 %v1840_v1  ;;  %278 = vst.msk [vmem:[#allocation2 + $0x170] sm:$0xff] %vm231_vm3, %v1842_v17  ;;  %279 = vst.msk [vmem:[#allocation2 + $0x178] sm:$0xff] %vm231_vm3, %v1842_v17  ;;  %v1768_v48 = vld [vmem:[%s1904_s25 + $0x84] ss:$8 sps:$4 sm:$0xff]   ;;  %v1772_v50 = vld [vmem:[%s1904_s25 + $0x80] ss:$8 sps:$4 sm:$0xff]  }
  0x22   : > { %280 = vst.msk [vmem:[#allocation2 + $0x180] sm:$0xff] %vm231_vm3, %v1842_v17  ;;  %281 = vst.msk [vmem:[#allocation2 + $0x188] sm:$0xff] %vm231_vm3, %v1842_v17  ;;  %v1770_v49 = vld [vmem:[%s1904_s25 + $0x184] ss:$8 sps:$4 sm:$0xff]   ;;  %v1773_v51 = vld [vmem:[%s1904_s25 + $0x180] ss:$8 sps:$4 sm:$0xff]  }
  0x23   : > { %282 = vst.msk [vmem:[#allocation2 + $0x190] sm:$0xff] %vm231_vm3, %v1842_v17  ;;  %283 = vst.msk [vmem:[#allocation2 + $0x198] sm:$0xff] %vm231_vm3, %v1842_v17  ;;  %v1774_v52 = vld [vmem:[%s1904_s25 + $0x94] ss:$8 sps:$4 sm:$0xff]   ;;  %v1778_v54 = vld [vmem:[%s1904_s25 + $0x90] ss:$8 sps:$4 sm:$0xff]  }
  0x24   : > { %907 = vmatpush1.bf16.msra.mxu0 %v1717_v10  ;;  %1680 = vmatpush1.bf16.msra.mxu1 %v1717_v10  ;;  %284 = vst.msk [vmem:[#allocation2 + $0x1a0] sm:$0xff] %vm231_vm3, %v1842_v17  ;;  %285 = vst.msk [vmem:[#allocation2 + $0x1a8] sm:$0xff] %vm231_vm3, %v1842_v17  ;;  %v1776_v53 = vld [vmem:[%s1904_s25 + $0x194] ss:$8 sps:$4 sm:$0xff]   ;;  %v1779_v55 = vld [vmem:[%s1904_s25 + $0x190] ss:$8 sps:$4 sm:$0xff]  }
  0x25   : > { %908 = vmatprep.subr.bf16.mxu0 %v1840_v1  ;;  %1671 = vmatprep.subr.bf16.mxu1 %v1840_v1  ;;  %286 = vst.msk [vmem:[#allocation2 + $0x1b0] sm:$0xff] %vm231_vm3, %v1842_v17  ;;  %287 = vst.msk [vmem:[#allocation2 + $0x1b8] sm:$0xff] %vm231_vm3, %v1842_v17  ;;  %v1780_v56 = vld [vmem:[%s1904_s25 + $0xa4] ss:$8 sps:$4 sm:$0xff]   ;;  %v1784_v58 = vld [vmem:[%s1904_s25 + $0xa0] ss:$8 sps:$4 sm:$0xff]  }
  0x26   : > { %288 = vst.msk [vmem:[#allocation2 + $0x1c0] sm:$0xff] %vm231_vm3, %v1842_v17  ;;  %289 = vst.msk [vmem:[#allocation2 + $0x1c8] sm:$0xff] %vm231_vm3, %v1842_v17  ;;  %v1782_v57 = vld [vmem:[%s1904_s25 + $0x1a4] ss:$8 sps:$4 sm:$0xff]   ;;  %v1785_v59 = vld [vmem:[%s1904_s25 + $0x1a0] ss:$8 sps:$4 sm:$0xff]  }
  0x27   : > { %290 = vst.msk [vmem:[#allocation2 + $0x1d0] sm:$0xff] %vm231_vm3, %v1842_v17  ;;  %291 = vst.msk [vmem:[#allocation2 + $0x1d8] sm:$0xff] %vm231_vm3, %v1842_v17  ;;  %v1786_v60 = vld [vmem:[%s1904_s25 + $0xb4] ss:$8 sps:$4 sm:$0xff]   ;;  %v1790_v62 = vld [vmem:[%s1904_s25 + $0xb0] ss:$8 sps:$4 sm:$0xff]  }
  0x28   : > { %909 = vmatpush1.bf16.msra.mxu0 %v1718_v13  ;;  %1681 = vmatpush1.bf16.msra.mxu1 %v1718_v13  ;;  %292 = vst.msk [vmem:[#allocation2 + $0x1e0] sm:$0xff] %vm231_vm3, %v1842_v17  ;;  %293 = vst.msk [vmem:[#allocation2 + $0x1e8] sm:$0xff] %vm231_vm3, %v1842_v17  ;;  %v1788_v61 = vld [vmem:[%s1904_s25 + $0x1b4] ss:$8 sps:$4 sm:$0xff]   ;;  %v1791_v63 = vld [vmem:[%s1904_s25 + $0x1b0] ss:$8 sps:$4 sm:$0xff]  }
  0x29   : > { %910 = vmatprep.subr.bf16.mxu0 %v1840_v1  ;;  %1672 = vmatprep.subr.bf16.mxu1 %v1840_v1  ;;  %294 = vst.msk [vmem:[#allocation2 + $0x1f0] sm:$0xff] %vm231_vm3, %v1842_v17  ;;  %295 = vst.msk [vmem:[#allocation2 + $0x1f8] sm:$0xff] %vm231_vm3, %v1842_v17  ;;  %v1792_v0 = vld [vmem:[%s1904_s25 + $0xc4] ss:$8 sps:$4 sm:$0xff]   ;;  %v1796_v2 = vld [vmem:[%s1904_s25 + $0xc0] ss:$8 sps:$4 sm:$0xff]  }
  0x2a   : > { %v1794_v1 = vld [vmem:[%s1904_s25 + $0x1c4] ss:$8 sps:$4 sm:$0xff]   ;;  %v1797_v3 = vld [vmem:[%s1904_s25 + $0x1c0] ss:$8 sps:$4 sm:$0xff]   ;;  %v1798_v4 = vld [vmem:[%s1904_s25 + $0xd4] ss:$8 sps:$4 sm:$0xff]  }
  0x2b   : > { %v1800_v5 = vld [vmem:[%s1904_s25 + $0x1d4] ss:$8 sps:$4 sm:$0xff]   ;;  %v1802_v6 = vld [vmem:[%s1904_s25 + $0xd0] ss:$8 sps:$4 sm:$0xff]   ;;  %v1804_v8 = vld [vmem:[%s1904_s25 + $0xe4] ss:$8 sps:$4 sm:$0xff]  }
  0x2c   : > { %911 = vmatpush1.bf16.msra.mxu0 %v1938_v16  ;;  %1682 = vmatpush1.bf16.msra.mxu1 %v1938_v16  ;;  %v1803_v7 = vld [vmem:[%s1904_s25 + $0x1d0] ss:$8 sps:$4 sm:$0xff]   ;;  %v1806_v9 = vld [vmem:[%s1904_s25 + $0x1e4] ss:$8 sps:$4 sm:$0xff]   ;;  %v1808_v10 = vld [vmem:[%s1904_s25 + $0xe0] ss:$8 sps:$4 sm:$0xff]  }
  0x2d   : > { %v1809_v11 = vld [vmem:[%s1904_s25 + $0x1e0] ss:$8 sps:$4 sm:$0xff]   ;;  %v1810_v12 = vld [vmem:[%s1904_s25 + $0xf4] ss:$8 sps:$4 sm:$0xff]   ;;  %v1814_v14 = vld [vmem:[%s1904_s25 + $0xf0] ss:$8 sps:$4 sm:$0xff]  }
  0x2e   : > { %v1812_v13 = vld [vmem:[%s1904_s25 + $0x1f4] ss:$8 sps:$4 sm:$0xff]   ;;  %v1815_v15 = vld [vmem:[%s1904_s25 + $0x1f0] ss:$8 sps:$4 sm:$0xff]   ;;  %v296_v16 = vld [vmem:[#allocation2] sm:$0xff] }
  0x2f   : > { %925 = vmatmul.mubr.bf16.vlgmr.msra.gmra.mrb[0].mxu0 %v1720_v18  ;;  %1053 = vmatmul.mubr.bf16.vlgmr.msra.gmra.mrb[0].mxu1 %v1723_v19  ;;  %v328_v17 = vld [vmem:[#allocation2 + $0x100] sm:$0xff] }
  0x30   : > { %1629 = vmatprep.mubr.msk.bf16.mxu0 %vm788_vm0, %v1726_v20  ;;  %1645 = vmatprep.mubr.msk.bf16.mxu1 %vm788_vm0, %v1728_v21  ;;  %v297_v20 = vld [vmem:[#allocation2 + $0x8] sm:$0xff] }
  0x31   : > { %v329_v21 = vld [vmem:[#allocation2 + $0x108] sm:$0xff] }
  0x37   : > { %933 = vmatmul.mubr.bf16.gmra.mrb[4].mxu0 %v1730_v22  ;;  %1061 = vmatmul.mubr.bf16.gmra.mrb[4].mxu1 %v1731_v23 }
  0x38   : > { %1630 = vmatprep.mubr.msk.bf16.mxu0 %vm788_vm0, %v1732_v24  ;;  %1646 = vmatprep.mubr.msk.bf16.mxu1 %vm788_vm0, %v1734_v25 }
  0x3f   : > { %941 = vmatmul.mubr.bf16.gmra.mrb[8].mxu0 %v1736_v26  ;;  %1069 = vmatmul.mubr.bf16.gmra.mrb[8].mxu1 %v1737_v27 }
  0x40   : > { %1631 = vmatprep.mubr.msk.bf16.mxu0 %vm788_vm0, %v1738_v28  ;;  %1647 = vmatprep.mubr.msk.bf16.mxu1 %vm788_vm0, %v1740_v29 }
  0x47   : > { %949 = vmatmul.mubr.bf16.gmra.mrb[12].mxu0 %v1742_v30  ;;  %1077 = vmatmul.mubr.bf16.gmra.mrb[12].mxu1 %v1743_v31 }
  0x48   : > { %1632 = vmatprep.mubr.msk.bf16.mxu0 %vm788_vm0, %v1744_v32  ;;  %1648 = vmatprep.mubr.msk.bf16.mxu1 %vm788_vm0, %v1746_v33  ;;  %v298_v32 = vld [vmem:[#allocation2 + $0x10] sm:$0xff] }
  0x49   : > { %v330_v33 = vld [vmem:[#allocation2 + $0x110] sm:$0xff] }
  0x4f   : > { %957 = vmatmul.mubr.bf16.gmra.mrb[16].mxu0 %v1748_v34  ;;  %1085 = vmatmul.mubr.bf16.gmra.mrb[16].mxu1 %v1749_v35 }
  0x50   : > { %1633 = vmatprep.mubr.msk.bf16.mxu0 %vm788_vm0, %v1750_v36  ;;  %1649 = vmatprep.mubr.msk.bf16.mxu1 %vm788_vm0, %v1752_v37  ;;  %v299_v36 = vld [vmem:[#allocation2 + $0x18] sm:$0xff] }
  0x51   : > { %v331_v37 = vld [vmem:[#allocation2 + $0x118] sm:$0xff] }
  0x57   : > { %965 = vmatmul.mubr.bf16.gmra.mrb[20].mxu0 %v1754_v38  ;;  %1093 = vmatmul.mubr.bf16.gmra.mrb[20].mxu1 %v1755_v39 }
  0x58   : > { %1634 = vmatprep.mubr.msk.bf16.mxu0 %vm788_vm0, %v1756_v40  ;;  %1650 = vmatprep.mubr.msk.bf16.mxu1 %vm788_vm0, %v1758_v41 }
  0x5f   : > { %973 = vmatmul.mubr.bf16.gmra.mrb[24].mxu0 %v1760_v42  ;;  %1101 = vmatmul.mubr.bf16.gmra.mrb[24].mxu1 %v1761_v43 }
  0x60   : > { %1635 = vmatprep.mubr.msk.bf16.mxu0 %vm788_vm0, %v1762_v44  ;;  %1651 = vmatprep.mubr.msk.bf16.mxu1 %vm788_vm0, %v1764_v45 }
  0x67   : > { %981 = vmatmul.mubr.bf16.gmra.mrb[28].mxu0 %v1766_v46  ;;  %1109 = vmatmul.mubr.bf16.gmra.mrb[28].mxu1 %v1767_v47 }
  0x68   : > { %1636 = vmatprep.mubr.msk.bf16.mxu0 %vm788_vm0, %v1768_v48  ;;  %1652 = vmatprep.mubr.msk.bf16.mxu1 %vm788_vm0, %v1770_v49 }
  0x6f   : > { %989 = vmatmul.mubr.bf16.gmra.mrb[32].mxu0 %v1772_v50  ;;  %1117 = vmatmul.mubr.bf16.gmra.mrb[32].mxu1 %v1773_v51 }
  0x70   : > { %1637 = vmatprep.mubr.msk.bf16.mxu0 %vm788_vm0, %v1774_v52  ;;  %1653 = vmatprep.mubr.msk.bf16.mxu1 %vm788_vm0, %v1776_v53  ;;  %v300_v52 = vld [vmem:[#allocation2 + $0x20] sm:$0xff] }
  0x71   : > { %v332_v53 = vld [vmem:[#allocation2 + $0x120] sm:$0xff] }
  0x77   : > { %997 = vmatmul.mubr.bf16.gmra.mrb[36].mxu0 %v1778_v54  ;;  %1125 = vmatmul.mubr.bf16.gmra.mrb[36].mxu1 %v1779_v55 }
  0x78   : > { %1638 = vmatprep.mubr.msk.bf16.mxu0 %vm788_vm0, %v1780_v56  ;;  %1654 = vmatprep.mubr.msk.bf16.mxu1 %vm788_vm0, %v1782_v57  ;;  %v301_v56 = vld [vmem:[#allocation2 + $0x28] sm:$0xff] }
  0x79   : > { %v333_v57 = vld [vmem:[#allocation2 + $0x128] sm:$0xff] }
  0x7f   : > { %1005 = vmatmul.mubr.bf16.gmra.mrb[40].mxu0 %v1784_v58  ;;  %1133 = vmatmul.mubr.bf16.gmra.mrb[40].mxu1 %v1785_v59 }
  0x80   : > { %1639 = vmatprep.mubr.msk.bf16.mxu0 %vm788_vm0, %v1786_v60  ;;  %1655 = vmatprep.mubr.msk.bf16.mxu1 %vm788_vm0, %v1788_v61 }
  0x87   : > { %1013 = vmatmul.mubr.bf16.gmra.mrb[44].mxu0 %v1790_v62  ;;  %1141 = vmatmul.mubr.bf16.gmra.mrb[44].mxu1 %v1791_v63 }
  0x88   : > { %1640 = vmatprep.mubr.msk.bf16.mxu0 %vm788_vm0, %v1792_v0  ;;  %1656 = vmatprep.mubr.msk.bf16.mxu1 %vm788_vm0, %v1794_v1 }
  0x8f   : > { %1021 = vmatmul.mubr.bf16.gmra.mrb[48].mxu0 %v1796_v2  ;;  %1149 = vmatmul.mubr.bf16.gmra.mrb[48].mxu1 %v1797_v3 }
  0x90   : > { %1641 = vmatprep.mubr.msk.bf16.mxu0 %vm788_vm0, %v1798_v4  ;;  %1657 = vmatprep.mubr.msk.bf16.mxu1 %vm788_vm0, %v1800_v5 }
  0x97   : > { %1029 = vmatmul.mubr.bf16.gmra.mrb[52].mxu0 %v1802_v6  ;;  %1157 = vmatmul.mubr.bf16.gmra.mrb[52].mxu1 %v1803_v7 }
  0x98   : > { %1642 = vmatprep.mubr.msk.bf16.mxu0 %vm788_vm0, %v1804_v8  ;;  %1658 = vmatprep.mubr.msk.bf16.mxu1 %vm788_vm0, %v1806_v9  ;;  %v302_v8 = vld [vmem:[#allocation2 + $0x30] sm:$0xff] }
  0x99   : > { %v334_v9 = vld [vmem:[#allocation2 + $0x130] sm:$0xff] }
  0x9f   : > { %1037 = vmatmul.mubr.bf16.gmra.mrb[56].mxu0 %v1808_v10  ;;  %1165 = vmatmul.mubr.bf16.gmra.mrb[56].mxu1 %v1809_v11 }
  0xa0   : > { %1643 = vmatprep.mubr.msk.bf16.mxu0 %vm788_vm0, %v1810_v12  ;;  %1659 = vmatprep.mubr.msk.bf16.mxu1 %vm788_vm0, %v1812_v13  ;;  %v303_v12 = vld [vmem:[#allocation2 + $0x38] sm:$0xff] }
  0xa1   : > { %v335_v13 = vld [vmem:[#allocation2 + $0x138] sm:$0xff] }
  0xa7   : > { %1045 = vmatmul.mubr.bf16.gmra.mrb[60].mxu0 %v1814_v14  ;;  %1173 = vmatmul.mubr.bf16.gmra.mrb[60].mxu1 %v1815_v15 }
 0x102   : > { %v926_v18 = vpop.f32.mrb[0].mxu0  ;;  %v1054_v19 = vpop.f32.mrb[0].mxu1 }
 0x103   : > { %v1181_v22 = vadd.f32 %v926_v18, %v296_v16  ;;  %v1213_v23 = vadd.f32 %v1054_v19, %v328_v17  ;;  %v928_v24 = vpop.f32.mrb[1].mxu0  ;;  %v1056_v25 = vpop.f32.mrb[1].mxu1 }
 0x104   : > { %v929_v26 = vpop.f32.mrb[2].mxu0  ;;  %v1057_v27 = vpop.f32.mrb[2].mxu1 }
 0x105   : > { %1246 = vst.msk [vmem:[#allocation2] sm:$0xff] %vm231_vm3, %v1181_v22  ;;  %1278 = vst.msk [vmem:[#allocation2 + $0x100] sm:$0xff] %vm231_vm3, %v1213_v23  ;;  %v1182_v28 = vadd.f32 %v929_v26, %v297_v20  ;;  %v1214_v29 = vadd.f32 %v1057_v27, %v329_v21  ;;  %v931_v30 = vpop.f32.mrb[3].mxu0  ;;  %v1059_v31 = vpop.f32.mrb[3].mxu1 }
 0x107   : > { %1247 = vst.msk [vmem:[#allocation2 + $0x8] sm:$0xff] %vm231_vm3, %v1182_v28  ;;  %1279 = vst.msk [vmem:[#allocation2 + $0x108] sm:$0xff] %vm231_vm3, %v1214_v29  ;;  %v304_v28 = vld [vmem:[#allocation2 + $0x40] sm:$0xff] }
 0x108   : > { %v336_v29 = vld [vmem:[#allocation2 + $0x140] sm:$0xff] }
 0x10a   : > { %v934_v34 = vpop.f32.mrb[4].mxu0  ;;  %v1062_v35 = vpop.f32.mrb[4].mxu1 }
 0x10b   : > { %v1183_v38 = vadd.f32 %v934_v34, %v298_v32  ;;  %v1215_v39 = vadd.f32 %v1062_v35, %v330_v33  ;;  %v936_v40 = vpop.f32.mrb[5].mxu0  ;;  %v1064_v41 = vpop.f32.mrb[5].mxu1  ;;  %v305_v32 = vld [vmem:[#allocation2 + $0x48] sm:$0xff] }
 0x10c   : > { %v1313_v42 = vld [vmem:[#allocation2] sm:$0xff]  ;;  %v937_v44 = vpop.f32.mrb[6].mxu0  ;;  %v1065_v45 = vpop.f32.mrb[6].mxu1  ;;  %v337_v33 = vld [vmem:[#allocation2 + $0x148] sm:$0xff] }
 0x10d   : > { %v1345_v43 = vld [vmem:[#allocation2 + $0x100] sm:$0xff]  ;;  %1377 = vst.msk [vmem:[%s2173_s15] sm:$0xff] %vm231_vm3, %v1313_v42  ;;  %1248 = vst.msk [vmem:[#allocation2 + $0x10] sm:$0xff] %vm231_vm3, %v1183_v38  ;;  %v1184_v46 = vadd.f32 %v937_v44, %v299_v36  ;;  %v1216_v47 = vadd.f32 %v1065_v45, %v331_v37  ;;  %v939_v48 = vpop.f32.mrb[7].mxu0  ;;  %v1067_v49 = vpop.f32.mrb[7].mxu1 }
 0x10e   : > { %1409 = vst.msk [vmem:[%s2173_s15 + $0x100] sm:$0xff] %vm231_vm3, %v1345_v43  ;;  %1280 = vst.msk [vmem:[#allocation2 + $0x110] sm:$0xff] %vm231_vm3, %v1215_v39  ;;  %v1314_v50 = vld [vmem:[#allocation2 + $0x8] sm:$0xff]  ;;  %v306_v48 = vld [vmem:[#allocation2 + $0x50] sm:$0xff] }
 0x10f   : > { %v1346_v51 = vld [vmem:[#allocation2 + $0x108] sm:$0xff]  ;;  %1378 = vst.msk [vmem:[%s2173_s15 + $0x8] sm:$0xff] %vm231_vm3, %v1314_v50  ;;  %1249 = vst.msk [vmem:[#allocation2 + $0x18] sm:$0xff] %vm231_vm3, %v1184_v46  ;;  %v338_v49 = vld [vmem:[#allocation2 + $0x150] sm:$0xff] }
 0x110   : > { %1410 = vst.msk [vmem:[%s2173_s15 + $0x108] sm:$0xff] %vm231_vm3, %v1346_v51  ;;  %1281 = vst.msk [vmem:[#allocation2 + $0x118] sm:$0xff] %vm231_vm3, %v1216_v47 }
 0x112   : > { %v942_v54 = vpop.f32.mrb[8].mxu0  ;;  %v1070_v55 = vpop.f32.mrb[8].mxu1 }
 0x113   : > { %v1185_v58 = vadd.f32 %v942_v54, %v300_v52  ;;  %v1217_v59 = vadd.f32 %v1070_v55, %v332_v53  ;;  %v944_v60 = vpop.f32.mrb[9].mxu0  ;;  %v1072_v61 = vpop.f32.mrb[9].mxu1  ;;  %v307_v52 = vld [vmem:[#allocation2 + $0x58] sm:$0xff] }
 0x114   : > { %v1315_v62 = vld [vmem:[#allocation2 + $0x10] sm:$0xff]  ;;  %v945_v0 = vpop.f32.mrb[10].mxu0  ;;  %v1073_v1 = vpop.f32.mrb[10].mxu1  ;;  %v339_v53 = vld [vmem:[#allocation2 + $0x158] sm:$0xff] }
 0x115   : > { %v1347_v63 = vld [vmem:[#allocation2 + $0x110] sm:$0xff]  ;;  %1379 = vst.msk [vmem:[%s2173_s15 + $0x10] sm:$0xff] %vm231_vm3, %v1315_v62  ;;  %1250 = vst.msk [vmem:[#allocation2 + $0x20] sm:$0xff] %vm231_vm3, %v1185_v58  ;;  %v1186_v2 = vadd.f32 %v945_v0, %v301_v56  ;;  %v1218_v3 = vadd.f32 %v1073_v1, %v333_v57  ;;  %v947_v4 = vpop.f32.mrb[11].mxu0  ;;  %v1075_v5 = vpop.f32.mrb[11].mxu1 }
 0x116   : > { %1411 = vst.msk [vmem:[%s2173_s15 + $0x110] sm:$0xff] %vm231_vm3, %v1347_v63  ;;  %1282 = vst.msk [vmem:[#allocation2 + $0x120] sm:$0xff] %vm231_vm3, %v1217_v59  ;;  %v1316_v6 = vld [vmem:[#allocation2 + $0x18] sm:$0xff]  ;;  %v308_v4 = vld [vmem:[#allocation2 + $0x60] sm:$0xff] }
 0x117   : > { %v1348_v7 = vld [vmem:[#allocation2 + $0x118] sm:$0xff]  ;;  %1380 = vst.msk [vmem:[%s2173_s15 + $0x18] sm:$0xff] %vm231_vm3, %v1316_v6  ;;  %1251 = vst.msk [vmem:[#allocation2 + $0x28] sm:$0xff] %vm231_vm3, %v1186_v2  ;;  %v340_v5 = vld [vmem:[#allocation2 + $0x160] sm:$0xff] }
 0x118   : > { %1412 = vst.msk [vmem:[%s2173_s15 + $0x118] sm:$0xff] %vm231_vm3, %v1348_v7  ;;  %1283 = vst.msk [vmem:[#allocation2 + $0x128] sm:$0xff] %vm231_vm3, %v1218_v3 }
 0x11a   : > { %v950_v10 = vpop.f32.mrb[12].mxu0  ;;  %v1078_v11 = vpop.f32.mrb[12].mxu1 }
 0x11b   : > { %v1187_v14 = vadd.f32 %v950_v10, %v302_v8  ;;  %v1219_v15 = vadd.f32 %v1078_v11, %v334_v9  ;;  %v952_v16 = vpop.f32.mrb[13].mxu0  ;;  %v1080_v17 = vpop.f32.mrb[13].mxu1  ;;  %v309_v8 = vld [vmem:[#allocation2 + $0x68] sm:$0xff] }
 0x11c   : > { %v1317_v18 = vld [vmem:[#allocation2 + $0x20] sm:$0xff]  ;;  %v953_v20 = vpop.f32.mrb[14].mxu0  ;;  %v1081_v21 = vpop.f32.mrb[14].mxu1  ;;  %v341_v9 = vld [vmem:[#allocation2 + $0x168] sm:$0xff] }
 0x11d   : > { %v1349_v19 = vld [vmem:[#allocation2 + $0x120] sm:$0xff]  ;;  %1381 = vst.msk [vmem:[%s2173_s15 + $0x20] sm:$0xff] %vm231_vm3, %v1317_v18  ;;  %1252 = vst.msk [vmem:[#allocation2 + $0x30] sm:$0xff] %vm231_vm3, %v1187_v14  ;;  %v1188_v22 = vadd.f32 %v953_v20, %v303_v12  ;;  %v1220_v23 = vadd.f32 %v1081_v21, %v335_v13  ;;  %v955_v24 = vpop.f32.mrb[15].mxu0  ;;  %v1083_v25 = vpop.f32.mrb[15].mxu1 }
 0x11e   : > { %1413 = vst.msk [vmem:[%s2173_s15 + $0x120] sm:$0xff] %vm231_vm3, %v1349_v19  ;;  %1284 = vst.msk [vmem:[#allocation2 + $0x130] sm:$0xff] %vm231_vm3, %v1219_v15  ;;  %v1318_v26 = vld [vmem:[#allocation2 + $0x28] sm:$0xff]  ;;  %v310_v24 = vld [vmem:[#allocation2 + $0x70] sm:$0xff] }
 0x11f   : > { %v1350_v27 = vld [vmem:[#allocation2 + $0x128] sm:$0xff]  ;;  %1382 = vst.msk [vmem:[%s2173_s15 + $0x28] sm:$0xff] %vm231_vm3, %v1318_v26  ;;  %1253 = vst.msk [vmem:[#allocation2 + $0x38] sm:$0xff] %vm231_vm3, %v1188_v22  ;;  %v342_v25 = vld [vmem:[#allocation2 + $0x170] sm:$0xff] }
 0x120   : > { %1414 = vst.msk [vmem:[%s2173_s15 + $0x128] sm:$0xff] %vm231_vm3, %v1350_v27  ;;  %1285 = vst.msk [vmem:[#allocation2 + $0x138] sm:$0xff] %vm231_vm3, %v1220_v23 }
 0x122   : > { %v958_v30 = vpop.f32.mrb[16].mxu0  ;;  %v1086_v31 = vpop.f32.mrb[16].mxu1 }
 0x123   : > { %v1189_v34 = vadd.f32 %v958_v30, %v304_v28  ;;  %v1221_v35 = vadd.f32 %v1086_v31, %v336_v29  ;;  %v960_v36 = vpop.f32.mrb[17].mxu0  ;;  %v1088_v37 = vpop.f32.mrb[17].mxu1  ;;  %v311_v28 = vld [vmem:[#allocation2 + $0x78] sm:$0xff] }
 0x124   : > { %v1319_v38 = vld [vmem:[#allocation2 + $0x30] sm:$0xff]  ;;  %v961_v40 = vpop.f32.mrb[18].mxu0  ;;  %v1089_v41 = vpop.f32.mrb[18].mxu1  ;;  %v343_v29 = vld [vmem:[#allocation2 + $0x178] sm:$0xff] }
 0x125   : > { %v1351_v39 = vld [vmem:[#allocation2 + $0x130] sm:$0xff]  ;;  %1383 = vst.msk [vmem:[%s2173_s15 + $0x30] sm:$0xff] %vm231_vm3, %v1319_v38  ;;  %1254 = vst.msk [vmem:[#allocation2 + $0x40] sm:$0xff] %vm231_vm3, %v1189_v34  ;;  %v1190_v42 = vadd.f32 %v961_v40, %v305_v32  ;;  %v1222_v43 = vadd.f32 %v1089_v41, %v337_v33  ;;  %v963_v44 = vpop.f32.mrb[19].mxu0  ;;  %v1091_v45 = vpop.f32.mrb[19].mxu1 }
 0x126   : > { %1415 = vst.msk [vmem:[%s2173_s15 + $0x130] sm:$0xff] %vm231_vm3, %v1351_v39  ;;  %1286 = vst.msk [vmem:[#allocation2 + $0x140] sm:$0xff] %vm231_vm3, %v1221_v35  ;;  %v1320_v46 = vld [vmem:[#allocation2 + $0x38] sm:$0xff]  ;;  %v312_v44 = vld [vmem:[#allocation2 + $0x80] sm:$0xff] }
 0x127   : > { %v1352_v47 = vld [vmem:[#allocation2 + $0x138] sm:$0xff]  ;;  %1384 = vst.msk [vmem:[%s2173_s15 + $0x38] sm:$0xff] %vm231_vm3, %v1320_v46  ;;  %1255 = vst.msk [vmem:[#allocation2 + $0x48] sm:$0xff] %vm231_vm3, %v1190_v42  ;;  %v344_v45 = vld [vmem:[#allocation2 + $0x180] sm:$0xff] }
 0x128   : > { %1416 = vst.msk [vmem:[%s2173_s15 + $0x138] sm:$0xff] %vm231_vm3, %v1352_v47  ;;  %1287 = vst.msk [vmem:[#allocation2 + $0x148] sm:$0xff] %vm231_vm3, %v1222_v43 }
 0x12a   : > { %v966_v50 = vpop.f32.mrb[20].mxu0  ;;  %v1094_v51 = vpop.f32.mrb[20].mxu1 }
 0x12b   : > { %v1191_v54 = vadd.f32 %v966_v50, %v306_v48  ;;  %v1223_v55 = vadd.f32 %v1094_v51, %v338_v49  ;;  %v968_v56 = vpop.f32.mrb[21].mxu0  ;;  %v1096_v57 = vpop.f32.mrb[21].mxu1  ;;  %v313_v48 = vld [vmem:[#allocation2 + $0x88] sm:$0xff] }
 0x12c   : > { %v1321_v58 = vld [vmem:[#allocation2 + $0x40] sm:$0xff]  ;;  %v969_v60 = vpop.f32.mrb[22].mxu0  ;;  %v1097_v61 = vpop.f32.mrb[22].mxu1  ;;  %v345_v49 = vld [vmem:[#allocation2 + $0x188] sm:$0xff] }
 0x12d   : > { %v1353_v59 = vld [vmem:[#allocation2 + $0x140] sm:$0xff]  ;;  %1385 = vst.msk [vmem:[%s2173_s15 + $0x40] sm:$0xff] %vm231_vm3, %v1321_v58  ;;  %1256 = vst.msk [vmem:[#allocation2 + $0x50] sm:$0xff] %vm231_vm3, %v1191_v54  ;;  %v1192_v62 = vadd.f32 %v969_v60, %v307_v52  ;;  %v1224_v63 = vadd.f32 %v1097_v61, %v339_v53  ;;  %v971_v0 = vpop.f32.mrb[23].mxu0  ;;  %v1099_v1 = vpop.f32.mrb[23].mxu1 }
 0x12e   : > { %1417 = vst.msk [vmem:[%s2173_s15 + $0x140] sm:$0xff] %vm231_vm3, %v1353_v59  ;;  %1288 = vst.msk [vmem:[#allocation2 + $0x150] sm:$0xff] %vm231_vm3, %v1223_v55  ;;  %v1322_v2 = vld [vmem:[#allocation2 + $0x48] sm:$0xff]  ;;  %v314_v0 = vld [vmem:[#allocation2 + $0x90] sm:$0xff] }
 0x12f   : > { %v1354_v3 = vld [vmem:[#allocation2 + $0x148] sm:$0xff]  ;;  %1386 = vst.msk [vmem:[%s2173_s15 + $0x48] sm:$0xff] %vm231_vm3, %v1322_v2  ;;  %1257 = vst.msk [vmem:[#allocation2 + $0x58] sm:$0xff] %vm231_vm3, %v1192_v62  ;;  %v346_v1 = vld [vmem:[#allocation2 + $0x190] sm:$0xff] }
 0x130   : > { %1418 = vst.msk [vmem:[%s2173_s15 + $0x148] sm:$0xff] %vm231_vm3, %v1354_v3  ;;  %1289 = vst.msk [vmem:[#allocation2 + $0x158] sm:$0xff] %vm231_vm3, %v1224_v63 }
 0x132   : > { %v974_v6 = vpop.f32.mrb[24].mxu0  ;;  %v1102_v7 = vpop.f32.mrb[24].mxu1 }
 0x133   : > { %v1193_v10 = vadd.f32 %v974_v6, %v308_v4  ;;  %v1225_v11 = vadd.f32 %v1102_v7, %v340_v5  ;;  %v976_v12 = vpop.f32.mrb[25].mxu0  ;;  %v1104_v13 = vpop.f32.mrb[25].mxu1  ;;  %v315_v4 = vld [vmem:[#allocation2 + $0x98] sm:$0xff] }
 0x134   : > { %v1323_v14 = vld [vmem:[#allocation2 + $0x50] sm:$0xff]  ;;  %v977_v16 = vpop.f32.mrb[26].mxu0  ;;  %v1105_v17 = vpop.f32.mrb[26].mxu1  ;;  %v347_v5 = vld [vmem:[#allocation2 + $0x198] sm:$0xff] }
 0x135   : > { %v1355_v15 = vld [vmem:[#allocation2 + $0x150] sm:$0xff]  ;;  %1387 = vst.msk [vmem:[%s2173_s15 + $0x50] sm:$0xff] %vm231_vm3, %v1323_v14  ;;  %1258 = vst.msk [vmem:[#allocation2 + $0x60] sm:$0xff] %vm231_vm3, %v1193_v10  ;;  %v1194_v18 = vadd.f32 %v977_v16, %v309_v8  ;;  %v1226_v19 = vadd.f32 %v1105_v17, %v341_v9  ;;  %v979_v20 = vpop.f32.mrb[27].mxu0  ;;  %v1107_v21 = vpop.f32.mrb[27].mxu1 }
 0x136   : > { %1419 = vst.msk [vmem:[%s2173_s15 + $0x150] sm:$0xff] %vm231_vm3, %v1355_v15  ;;  %1290 = vst.msk [vmem:[#allocation2 + $0x160] sm:$0xff] %vm231_vm3, %v1225_v11  ;;  %v1324_v22 = vld [vmem:[#allocation2 + $0x58] sm:$0xff]  ;;  %v316_v20 = vld [vmem:[#allocation2 + $0xa0] sm:$0xff] }
 0x137   : > { %v1356_v23 = vld [vmem:[#allocation2 + $0x158] sm:$0xff]  ;;  %1388 = vst.msk [vmem:[%s2173_s15 + $0x58] sm:$0xff] %vm231_vm3, %v1324_v22  ;;  %1259 = vst.msk [vmem:[#allocation2 + $0x68] sm:$0xff] %vm231_vm3, %v1194_v18  ;;  %v348_v21 = vld [vmem:[#allocation2 + $0x1a0] sm:$0xff] }
 0x138   : > { %1420 = vst.msk [vmem:[%s2173_s15 + $0x158] sm:$0xff] %vm231_vm3, %v1356_v23  ;;  %1291 = vst.msk [vmem:[#allocation2 + $0x168] sm:$0xff] %vm231_vm3, %v1226_v19 }
 0x13a   : > { %v982_v26 = vpop.f32.mrb[28].mxu0  ;;  %v1110_v27 = vpop.f32.mrb[28].mxu1 }
 0x13b   : > { %v1195_v30 = vadd.f32 %v982_v26, %v310_v24  ;;  %v1227_v31 = vadd.f32 %v1110_v27, %v342_v25  ;;  %v984_v32 = vpop.f32.mrb[29].mxu0  ;;  %v1112_v33 = vpop.f32.mrb[29].mxu1  ;;  %v317_v24 = vld [vmem:[#allocation2 + $0xa8] sm:$0xff] }
 0x13c   : > { %v1325_v34 = vld [vmem:[#allocation2 + $0x60] sm:$0xff]  ;;  %v985_v36 = vpop.f32.mrb[30].mxu0  ;;  %v1113_v37 = vpop.f32.mrb[30].mxu1  ;;  %v349_v25 = vld [vmem:[#allocation2 + $0x1a8] sm:$0xff] }
 0x13d   : > { %v1357_v35 = vld [vmem:[#allocation2 + $0x160] sm:$0xff]  ;;  %1389 = vst.msk [vmem:[%s2173_s15 + $0x60] sm:$0xff] %vm231_vm3, %v1325_v34  ;;  %1260 = vst.msk [vmem:[#allocation2 + $0x70] sm:$0xff] %vm231_vm3, %v1195_v30  ;;  %v1196_v38 = vadd.f32 %v985_v36, %v311_v28  ;;  %v1228_v39 = vadd.f32 %v1113_v37, %v343_v29  ;;  %v987_v40 = vpop.f32.mrb[31].mxu0  ;;  %v1115_v41 = vpop.f32.mrb[31].mxu1 }
 0x13e   : > { %1421 = vst.msk [vmem:[%s2173_s15 + $0x160] sm:$0xff] %vm231_vm3, %v1357_v35  ;;  %1292 = vst.msk [vmem:[#allocation2 + $0x170] sm:$0xff] %vm231_vm3, %v1227_v31  ;;  %v1326_v42 = vld [vmem:[#allocation2 + $0x68] sm:$0xff]  ;;  %v318_v40 = vld [vmem:[#allocation2 + $0xb0] sm:$0xff] }
 0x13f   : > { %v1358_v43 = vld [vmem:[#allocation2 + $0x168] sm:$0xff]  ;;  %1390 = vst.msk [vmem:[%s2173_s15 + $0x68] sm:$0xff] %vm231_vm3, %v1326_v42  ;;  %1261 = vst.msk [vmem:[#allocation2 + $0x78] sm:$0xff] %vm231_vm3, %v1196_v38  ;;  %v350_v41 = vld [vmem:[#allocation2 + $0x1b0] sm:$0xff] }
 0x140   : > { %1422 = vst.msk [vmem:[%s2173_s15 + $0x168] sm:$0xff] %vm231_vm3, %v1358_v43  ;;  %1293 = vst.msk [vmem:[#allocation2 + $0x178] sm:$0xff] %vm231_vm3, %v1228_v39 }
 0x142   : > { %v990_v46 = vpop.f32.mrb[32].mxu0  ;;  %v1118_v47 = vpop.f32.mrb[32].mxu1 }
 0x143   : > { %v1197_v50 = vadd.f32 %v990_v46, %v312_v44  ;;  %v1229_v51 = vadd.f32 %v1118_v47, %v344_v45  ;;  %v992_v52 = vpop.f32.mrb[33].mxu0  ;;  %v1120_v53 = vpop.f32.mrb[33].mxu1  ;;  %v319_v44 = vld [vmem:[#allocation2 + $0xb8] sm:$0xff] }
 0x144   : > { %v1327_v54 = vld [vmem:[#allocation2 + $0x70] sm:$0xff]  ;;  %v993_v56 = vpop.f32.mrb[34].mxu0  ;;  %v1121_v57 = vpop.f32.mrb[34].mxu1  ;;  %v351_v45 = vld [vmem:[#allocation2 + $0x1b8] sm:$0xff] }
 0x145   : > { %v1359_v55 = vld [vmem:[#allocation2 + $0x170] sm:$0xff]  ;;  %1391 = vst.msk [vmem:[%s2173_s15 + $0x70] sm:$0xff] %vm231_vm3, %v1327_v54  ;;  %1262 = vst.msk [vmem:[#allocation2 + $0x80] sm:$0xff] %vm231_vm3, %v1197_v50  ;;  %v1198_v58 = vadd.f32 %v993_v56, %v313_v48  ;;  %v1230_v59 = vadd.f32 %v1121_v57, %v345_v49  ;;  %v995_v60 = vpop.f32.mrb[35].mxu0  ;;  %v1123_v61 = vpop.f32.mrb[35].mxu1 }
 0x146   : > { %1423 = vst.msk [vmem:[%s2173_s15 + $0x170] sm:$0xff] %vm231_vm3, %v1359_v55  ;;  %1294 = vst.msk [vmem:[#allocation2 + $0x180] sm:$0xff] %vm231_vm3, %v1229_v51  ;;  %v1328_v62 = vld [vmem:[#allocation2 + $0x78] sm:$0xff]  ;;  %v320_v60 = vld [vmem:[#allocation2 + $0xc0] sm:$0xff] }
 0x147   : > { %v1360_v63 = vld [vmem:[#allocation2 + $0x178] sm:$0xff]  ;;  %1392 = vst.msk [vmem:[%s2173_s15 + $0x78] sm:$0xff] %vm231_vm3, %v1328_v62  ;;  %1263 = vst.msk [vmem:[#allocation2 + $0x88] sm:$0xff] %vm231_vm3, %v1198_v58  ;;  %v352_v61 = vld [vmem:[#allocation2 + $0x1c0] sm:$0xff] }
 0x148   : > { %1424 = vst.msk [vmem:[%s2173_s15 + $0x178] sm:$0xff] %vm231_vm3, %v1360_v63  ;;  %1295 = vst.msk [vmem:[#allocation2 + $0x188] sm:$0xff] %vm231_vm3, %v1230_v59 }
 0x14a   : > { %v998_v2 = vpop.f32.mrb[36].mxu0  ;;  %v1126_v3 = vpop.f32.mrb[36].mxu1 }
 0x14b   : > { %v1199_v6 = vadd.f32 %v998_v2, %v314_v0  ;;  %v1231_v7 = vadd.f32 %v1126_v3, %v346_v1  ;;  %v1000_v8 = vpop.f32.mrb[37].mxu0  ;;  %v1128_v9 = vpop.f32.mrb[37].mxu1  ;;  %v321_v0 = vld [vmem:[#allocation2 + $0xc8] sm:$0xff] }
 0x14c   : > { %v1329_v10 = vld [vmem:[#allocation2 + $0x80] sm:$0xff]  ;;  %v1001_v12 = vpop.f32.mrb[38].mxu0  ;;  %v1129_v13 = vpop.f32.mrb[38].mxu1  ;;  %v353_v1 = vld [vmem:[#allocation2 + $0x1c8] sm:$0xff] }
 0x14d   : > { %v1361_v11 = vld [vmem:[#allocation2 + $0x180] sm:$0xff]  ;;  %1393 = vst.msk [vmem:[%s2173_s15 + $0x80] sm:$0xff] %vm231_vm3, %v1329_v10  ;;  %1264 = vst.msk [vmem:[#allocation2 + $0x90] sm:$0xff] %vm231_vm3, %v1199_v6  ;;  %v1200_v14 = vadd.f32 %v1001_v12, %v315_v4  ;;  %v1232_v15 = vadd.f32 %v1129_v13, %v347_v5  ;;  %v1003_v16 = vpop.f32.mrb[39].mxu0  ;;  %v1131_v17 = vpop.f32.mrb[39].mxu1 }
 0x14e   : > { %1425 = vst.msk [vmem:[%s2173_s15 + $0x180] sm:$0xff] %vm231_vm3, %v1361_v11  ;;  %1296 = vst.msk [vmem:[#allocation2 + $0x190] sm:$0xff] %vm231_vm3, %v1231_v7  ;;  %v1330_v18 = vld [vmem:[#allocation2 + $0x88] sm:$0xff]  ;;  %v322_v16 = vld [vmem:[#allocation2 + $0xd0] sm:$0xff] }
 0x14f   : > { %v1362_v19 = vld [vmem:[#allocation2 + $0x188] sm:$0xff]  ;;  %1394 = vst.msk [vmem:[%s2173_s15 + $0x88] sm:$0xff] %vm231_vm3, %v1330_v18  ;;  %1265 = vst.msk [vmem:[#allocation2 + $0x98] sm:$0xff] %vm231_vm3, %v1200_v14  ;;  %v354_v17 = vld [vmem:[#allocation2 + $0x1d0] sm:$0xff] }
 0x150   : > { %1426 = vst.msk [vmem:[%s2173_s15 + $0x188] sm:$0xff] %vm231_vm3, %v1362_v19  ;;  %1297 = vst.msk [vmem:[#allocation2 + $0x198] sm:$0xff] %vm231_vm3, %v1232_v15 }
 0x152   : > { %v1006_v22 = vpop.f32.mrb[40].mxu0  ;;  %v1134_v23 = vpop.f32.mrb[40].mxu1 }
 0x153   : > { %v1201_v26 = vadd.f32 %v1006_v22, %v316_v20  ;;  %v1233_v27 = vadd.f32 %v1134_v23, %v348_v21  ;;  %v1008_v28 = vpop.f32.mrb[41].mxu0  ;;  %v1136_v29 = vpop.f32.mrb[41].mxu1  ;;  %v323_v20 = vld [vmem:[#allocation2 + $0xd8] sm:$0xff] }
 0x154   : > { %v1331_v30 = vld [vmem:[#allocation2 + $0x90] sm:$0xff]  ;;  %v1009_v32 = vpop.f32.mrb[42].mxu0  ;;  %v1137_v33 = vpop.f32.mrb[42].mxu1  ;;  %v355_v21 = vld [vmem:[#allocation2 + $0x1d8] sm:$0xff] }
 0x155   : > { %v1363_v31 = vld [vmem:[#allocation2 + $0x190] sm:$0xff]  ;;  %1395 = vst.msk [vmem:[%s2173_s15 + $0x90] sm:$0xff] %vm231_vm3, %v1331_v30  ;;  %1266 = vst.msk [vmem:[#allocation2 + $0xa0] sm:$0xff] %vm231_vm3, %v1201_v26  ;;  %v1202_v34 = vadd.f32 %v1009_v32, %v317_v24  ;;  %v1234_v35 = vadd.f32 %v1137_v33, %v349_v25  ;;  %v1011_v36 = vpop.f32.mrb[43].mxu0  ;;  %v1139_v37 = vpop.f32.mrb[43].mxu1 }
 0x156   : > { %1427 = vst.msk [vmem:[%s2173_s15 + $0x190] sm:$0xff] %vm231_vm3, %v1363_v31  ;;  %1298 = vst.msk [vmem:[#allocation2 + $0x1a0] sm:$0xff] %vm231_vm3, %v1233_v27  ;;  %v1332_v38 = vld [vmem:[#allocation2 + $0x98] sm:$0xff]  ;;  %v324_v36 = vld [vmem:[#allocation2 + $0xe0] sm:$0xff] }
 0x157   : > { %v1364_v39 = vld [vmem:[#allocation2 + $0x198] sm:$0xff]  ;;  %1396 = vst.msk [vmem:[%s2173_s15 + $0x98] sm:$0xff] %vm231_vm3, %v1332_v38  ;;  %1267 = vst.msk [vmem:[#allocation2 + $0xa8] sm:$0xff] %vm231_vm3, %v1202_v34  ;;  %v356_v37 = vld [vmem:[#allocation2 + $0x1e0] sm:$0xff] }
 0x158   : > { %1428 = vst.msk [vmem:[%s2173_s15 + $0x198] sm:$0xff] %vm231_vm3, %v1364_v39  ;;  %1299 = vst.msk [vmem:[#allocation2 + $0x1a8] sm:$0xff] %vm231_vm3, %v1234_v35 }
 0x15a   : > { %v1014_v42 = vpop.f32.mrb[44].mxu0  ;;  %v1142_v43 = vpop.f32.mrb[44].mxu1 }
 0x15b   : > { %v1203_v46 = vadd.f32 %v1014_v42, %v318_v40  ;;  %v1235_v47 = vadd.f32 %v1142_v43, %v350_v41  ;;  %v1016_v48 = vpop.f32.mrb[45].mxu0  ;;  %v1144_v49 = vpop.f32.mrb[45].mxu1  ;;  %v325_v40 = vld [vmem:[#allocation2 + $0xe8] sm:$0xff] }
 0x15c   : > { %v1333_v50 = vld [vmem:[#allocation2 + $0xa0] sm:$0xff]  ;;  %v1017_v52 = vpop.f32.mrb[46].mxu0  ;;  %v1145_v53 = vpop.f32.mrb[46].mxu1  ;;  %v357_v41 = vld [vmem:[#allocation2 + $0x1e8] sm:$0xff] }
 0x15d   : > { %v1365_v51 = vld [vmem:[#allocation2 + $0x1a0] sm:$0xff]  ;;  %1397 = vst.msk [vmem:[%s2173_s15 + $0xa0] sm:$0xff] %vm231_vm3, %v1333_v50  ;;  %1268 = vst.msk [vmem:[#allocation2 + $0xb0] sm:$0xff] %vm231_vm3, %v1203_v46  ;;  %v1204_v54 = vadd.f32 %v1017_v52, %v319_v44  ;;  %v1236_v55 = vadd.f32 %v1145_v53, %v351_v45  ;;  %v1019_v56 = vpop.f32.mrb[47].mxu0  ;;  %v1147_v57 = vpop.f32.mrb[47].mxu1 }
 0x15e   : > { %1429 = vst.msk [vmem:[%s2173_s15 + $0x1a0] sm:$0xff] %vm231_vm3, %v1365_v51  ;;  %1300 = vst.msk [vmem:[#allocation2 + $0x1b0] sm:$0xff] %vm231_vm3, %v1235_v47  ;;  %v1334_v58 = vld [vmem:[#allocation2 + $0xa8] sm:$0xff]  ;;  %v326_v56 = vld [vmem:[#allocation2 + $0xf0] sm:$0xff] }
 0x15f   : > { %v1366_v59 = vld [vmem:[#allocation2 + $0x1a8] sm:$0xff]  ;;  %1398 = vst.msk [vmem:[%s2173_s15 + $0xa8] sm:$0xff] %vm231_vm3, %v1334_v58  ;;  %1269 = vst.msk [vmem:[#allocation2 + $0xb8] sm:$0xff] %vm231_vm3, %v1204_v54  ;;  %v358_v57 = vld [vmem:[#allocation2 + $0x1f0] sm:$0xff] }
 0x160   : > { %1430 = vst.msk [vmem:[%s2173_s15 + $0x1a8] sm:$0xff] %vm231_vm3, %v1366_v59  ;;  %1301 = vst.msk [vmem:[#allocation2 + $0x1b8] sm:$0xff] %vm231_vm3, %v1236_v55 }
 0x162   : > { %v1022_v62 = vpop.f32.mrb[48].mxu0  ;;  %v1150_v63 = vpop.f32.mrb[48].mxu1 }
 0x163   : > { %v1205_v2 = vadd.f32 %v1022_v62, %v320_v60  ;;  %v1237_v3 = vadd.f32 %v1150_v63, %v352_v61  ;;  %v1024_v4 = vpop.f32.mrb[49].mxu0  ;;  %v1152_v5 = vpop.f32.mrb[49].mxu1  ;;  %v327_v60 = vld [vmem:[#allocation2 + $0xf8] sm:$0xff] }
 0x164   : > { %v1335_v6 = vld [vmem:[#allocation2 + $0xb0] sm:$0xff]  ;;  %v1025_v8 = vpop.f32.mrb[50].mxu0  ;;  %v1153_v9 = vpop.f32.mrb[50].mxu1  ;;  %v359_v61 = vld [vmem:[#allocation2 + $0x1f8] sm:$0xff] }
 0x165   : > { %v1367_v7 = vld [vmem:[#allocation2 + $0x1b0] sm:$0xff]  ;;  %1399 = vst.msk [vmem:[%s2173_s15 + $0xb0] sm:$0xff] %vm231_vm3, %v1335_v6  ;;  %1270 = vst.msk [vmem:[#allocation2 + $0xc0] sm:$0xff] %vm231_vm3, %v1205_v2  ;;  %v1206_v10 = vadd.f32 %v1025_v8, %v321_v0  ;;  %v1238_v11 = vadd.f32 %v1153_v9, %v353_v1  ;;  %v1027_v12 = vpop.f32.mrb[51].mxu0  ;;  %v1155_v13 = vpop.f32.mrb[51].mxu1 }
 0x166   : > { %1431 = vst.msk [vmem:[%s2173_s15 + $0x1b0] sm:$0xff] %vm231_vm3, %v1367_v7  ;;  %1302 = vst.msk [vmem:[#allocation2 + $0x1c0] sm:$0xff] %vm231_vm3, %v1237_v3  ;;  %v1336_v14 = vld [vmem:[#allocation2 + $0xb8] sm:$0xff] }
 0x167   : > { %v1368_v15 = vld [vmem:[#allocation2 + $0x1b8] sm:$0xff]  ;;  %1400 = vst.msk [vmem:[%s2173_s15 + $0xb8] sm:$0xff] %vm231_vm3, %v1336_v14  ;;  %1271 = vst.msk [vmem:[#allocation2 + $0xc8] sm:$0xff] %vm231_vm3, %v1206_v10 }
 0x168   : > { %1432 = vst.msk [vmem:[%s2173_s15 + $0x1b8] sm:$0xff] %vm231_vm3, %v1368_v15  ;;  %1303 = vst.msk [vmem:[#allocation2 + $0x1c8] sm:$0xff] %vm231_vm3, %v1238_v11 }
 0x16a   : > { %v1030_v18 = vpop.f32.mrb[52].mxu0  ;;  %v1158_v19 = vpop.f32.mrb[52].mxu1 }
 0x16b   : > { %v1207_v22 = vadd.f32 %v1030_v18, %v322_v16  ;;  %v1239_v23 = vadd.f32 %v1158_v19, %v354_v17  ;;  %v1032_v24 = vpop.f32.mrb[53].mxu0  ;;  %v1160_v25 = vpop.f32.mrb[53].mxu1 }
 0x16c   : > { %v1337_v26 = vld [vmem:[#allocation2 + $0xc0] sm:$0xff]  ;;  %v1033_v28 = vpop.f32.mrb[54].mxu0  ;;  %v1161_v29 = vpop.f32.mrb[54].mxu1 }
 0x16d   : > { %v1369_v27 = vld [vmem:[#allocation2 + $0x1c0] sm:$0xff]  ;;  %1401 = vst.msk [vmem:[%s2173_s15 + $0xc0] sm:$0xff] %vm231_vm3, %v1337_v26  ;;  %1272 = vst.msk [vmem:[#allocation2 + $0xd0] sm:$0xff] %vm231_vm3, %v1207_v22  ;;  %v1208_v30 = vadd.f32 %v1033_v28, %v323_v20  ;;  %v1240_v31 = vadd.f32 %v1161_v29, %v355_v21  ;;  %v1035_v32 = vpop.f32.mrb[55].mxu0  ;;  %v1163_v33 = vpop.f32.mrb[55].mxu1 }
 0x16e   : > { %1433 = vst.msk [vmem:[%s2173_s15 + $0x1c0] sm:$0xff] %vm231_vm3, %v1369_v27  ;;  %1304 = vst.msk [vmem:[#allocation2 + $0x1d0] sm:$0xff] %vm231_vm3, %v1239_v23  ;;  %v1338_v34 = vld [vmem:[#allocation2 + $0xc8] sm:$0xff] }
 0x16f   : > { %v1370_v35 = vld [vmem:[#allocation2 + $0x1c8] sm:$0xff]  ;;  %1402 = vst.msk [vmem:[%s2173_s15 + $0xc8] sm:$0xff] %vm231_vm3, %v1338_v34  ;;  %1273 = vst.msk [vmem:[#allocation2 + $0xd8] sm:$0xff] %vm231_vm3, %v1208_v30 }
 0x170   : > { %1434 = vst.msk [vmem:[%s2173_s15 + $0x1c8] sm:$0xff] %vm231_vm3, %v1370_v35  ;;  %1305 = vst.msk [vmem:[#allocation2 + $0x1d8] sm:$0xff] %vm231_vm3, %v1240_v31 }
 0x172   : > { %v1038_v38 = vpop.f32.mrb[56].mxu0  ;;  %v1166_v39 = vpop.f32.mrb[56].mxu1 }
 0x173   : > { %v1209_v42 = vadd.f32 %v1038_v38, %v324_v36  ;;  %v1241_v43 = vadd.f32 %v1166_v39, %v356_v37  ;;  %v1040_v44 = vpop.f32.mrb[57].mxu0  ;;  %v1168_v45 = vpop.f32.mrb[57].mxu1 }
 0x174   : > { %v1339_v46 = vld [vmem:[#allocation2 + $0xd0] sm:$0xff]  ;;  %v1041_v48 = vpop.f32.mrb[58].mxu0  ;;  %v1169_v49 = vpop.f32.mrb[58].mxu1 }
 0x175   : > { %v1371_v47 = vld [vmem:[#allocation2 + $0x1d0] sm:$0xff]  ;;  %1403 = vst.msk [vmem:[%s2173_s15 + $0xd0] sm:$0xff] %vm231_vm3, %v1339_v46  ;;  %1274 = vst.msk [vmem:[#allocation2 + $0xe0] sm:$0xff] %vm231_vm3, %v1209_v42  ;;  %v1210_v50 = vadd.f32 %v1041_v48, %v325_v40  ;;  %v1242_v51 = vadd.f32 %v1169_v49, %v357_v41  ;;  %v1043_v52 = vpop.f32.mrb[59].mxu0  ;;  %v1171_v53 = vpop.f32.mrb[59].mxu1 }
 0x176   : > { %1435 = vst.msk [vmem:[%s2173_s15 + $0x1d0] sm:$0xff] %vm231_vm3, %v1371_v47  ;;  %1306 = vst.msk [vmem:[#allocation2 + $0x1e0] sm:$0xff] %vm231_vm3, %v1241_v43  ;;  %v1340_v54 = vld [vmem:[#allocation2 + $0xd8] sm:$0xff] }
 0x177   : > { %v1372_v55 = vld [vmem:[#allocation2 + $0x1d8] sm:$0xff]  ;;  %1404 = vst.msk [vmem:[%s2173_s15 + $0xd8] sm:$0xff] %vm231_vm3, %v1340_v54  ;;  %1275 = vst.msk [vmem:[#allocation2 + $0xe8] sm:$0xff] %vm231_vm3, %v1210_v50 }
 0x178   : > { %1436 = vst.msk [vmem:[%s2173_s15 + $0x1d8] sm:$0xff] %vm231_vm3, %v1372_v55  ;;  %1307 = vst.msk [vmem:[#allocation2 + $0x1e8] sm:$0xff] %vm231_vm3, %v1242_v51 }
 0x17a   : > { %v1046_v58 = vpop.f32.mrb[60].mxu0  ;;  %v1174_v59 = vpop.f32.mrb[60].mxu1 }
 0x17b   : > { %v1211_v62 = vadd.f32 %v1046_v58, %v326_v56  ;;  %v1243_v63 = vadd.f32 %v1174_v59, %v358_v57  ;;  %v1048_v0 = vpop.f32.mrb[61].mxu0  ;;  %v1176_v1 = vpop.f32.mrb[61].mxu1 }
 0x17c   : > { %v1341_v2 = vld [vmem:[#allocation2 + $0xe0] sm:$0xff]  ;;  %v1049_v4 = vpop.f32.mrb[62].mxu0  ;;  %v1177_v5 = vpop.f32.mrb[62].mxu1 }
 0x17d   : > { %v1373_v3 = vld [vmem:[#allocation2 + $0x1e0] sm:$0xff]  ;;  %1405 = vst.msk [vmem:[%s2173_s15 + $0xe0] sm:$0xff] %vm231_vm3, %v1341_v2  ;;  %1276 = vst.msk [vmem:[#allocation2 + $0xf0] sm:$0xff] %vm231_vm3, %v1211_v62  ;;  %v1212_v6 = vadd.f32 %v1049_v4, %v327_v60  ;;  %v1244_v7 = vadd.f32 %v1177_v5, %v359_v61  ;;  %v1051_v8 = vpop.f32.mrb[63].mxu0  ;;  %v1179_v9 = vpop.f32.mrb[63].mxu1 }
 0x17e   : > { %1437 = vst.msk [vmem:[%s2173_s15 + $0x1e0] sm:$0xff] %vm231_vm3, %v1373_v3  ;;  %1308 = vst.msk [vmem:[#allocation2 + $0x1f0] sm:$0xff] %vm231_vm3, %v1243_v63  ;;  %v1342_v10 = vld [vmem:[#allocation2 + $0xe8] sm:$0xff] }
 0x17f   : > { %v1374_v11 = vld [vmem:[#allocation2 + $0x1e8] sm:$0xff]  ;;  %1406 = vst.msk [vmem:[%s2173_s15 + $0xe8] sm:$0xff] %vm231_vm3, %v1342_v10  ;;  %1277 = vst.msk [vmem:[#allocation2 + $0xf8] sm:$0xff] %vm231_vm3, %v1212_v6 }
 0x180   : > { %1438 = vst.msk [vmem:[%s2173_s15 + $0x1e8] sm:$0xff] %vm231_vm3, %v1374_v11  ;;  %1309 = vst.msk [vmem:[#allocation2 + $0x1f8] sm:$0xff] %vm231_vm3, %v1244_v7 }
 0x184   : > { %v1343_v12 = vld [vmem:[#allocation2 + $0xf0] sm:$0xff] }
 0x185   : > { %v1375_v13 = vld [vmem:[#allocation2 + $0x1f0] sm:$0xff]  ;;  %1407 = vst.msk [vmem:[%s2173_s15 + $0xf0] sm:$0xff] %vm231_vm3, %v1343_v12 }
 0x186   : > { %1439 = vst.msk [vmem:[%s2173_s15 + $0x1f0] sm:$0xff] %vm231_vm3, %v1375_v13  ;;  %v1344_v14 = vld [vmem:[#allocation2 + $0xf8] sm:$0xff] }
 0x187   : > { %v1376_v15 = vld [vmem:[#allocation2 + $0x1f8] sm:$0xff]  ;;  %1408 = vst.msk [vmem:[%s2173_s15 + $0xf8] sm:$0xff] %vm231_vm3, %v1344_v14 }
 0x188   : > { %1440 = vst.msk [vmem:[%s2173_s15 + $0x1f8] sm:$0xff] %vm231_vm3, %v1376_v15 }
 0x189 PF: > { %s12_s11 = sadd.s32 1, %s1838_s11   ;;  %s2375_s9 = smov %s1834_s10 }
 0x18a   : > { %p9_p5 = scmp.ge.s32.totalorder %s12_s11, 6   ;;  %s2376_s10 = smov %s2378_s12 }
 0x18c   :  { %11 = sbr.rel (!%p9_p5) target bundleno = 2 (0x2), region = 69 }

</bundles_post_ra>
